<compile_context>
chip_gen: v7x
topology: tpu7x:2x2x1
jax: 0.10.0
libtpu: 0.0.40
codegen_flags: <defaults>
</compile_context>

<pallas_src>
import functools

import jax
import jax.numpy as jnp
from jax.experimental import pallas as pl
from jax.experimental.pallas import tpu as pltpu

LAYER_DIMS = [23, 50, 50, 50, 50, 50, 50, 50, 1]

# Hard-constraint constants from the script.
H_BOUN1_0 = 202.0
H_BOUN2_0 = 200.0
H_BOUN1 = (H_BOUN1_0 - H_BOUN2_0) / (H_BOUN1_0 - H_BOUN2_0)  # = 1.0
H_BOUN2 = (H_BOUN2_0 - H_BOUN2_0) / (H_BOUN1_0 - H_BOUN2_0)  # = 0.0


def _swish(a):
    # swish(x) = x * sigmoid(x) = 0.5 * x * (1 + tanh(x/2)).
    # tanh lowers to the EUP (separate VLIW slot), keeping the 4-slot VPU free.
    return 0.5 * a * (1.0 + jnp.tanh(0.5 * a))


def net_hardway_kernel(x_ref, w0_ref, *refs, matmul_dtype):
    """refs = (wT1, b1, wT2, b2, ..., wT7, b7, out_ref).

    x_ref:  (24, TILE_N)    batch on lanes; rows 0..22 = features, row 23 = 1.0
    w0_ref: (50, 24)        layer-0 transposed weight with bias folded in
    wT_l:   (F_out, F_in)   transposed Linear weight, layers 1..7
    b_l:    (F_out, 1)      bias, broadcast over lanes
    out:    (1, TILE_N)     lane-dense output row
    """
    out_ref = refs[-1]
    rest = refs[:-1]
    n_rest = len(rest) // 2

    x_aug = x_ref[...]                                   # (24, TN) f32

    # Layer 0: bias folded into the augmented weight (last column x ones row).
    a = jnp.dot(w0_ref[...].astype(matmul_dtype), x_aug.astype(matmul_dtype),
                preferred_element_type=jnp.float32)      # (50, TN) f32
    a = _swish(a)

    for l in range(n_rest):
        wT = rest[2 * l][...]                            # (F_out, F_in)
        b = rest[2 * l + 1][...]                         # (F_out, 1)
        a = jnp.dot(wT.astype(matmul_dtype), a.astype(matmul_dtype),
                    preferred_element_type=jnp.float32) + b
        if l < n_rest - 1:                               # no activation after last Linear
            a = _swish(a)
    out = a                                              # (1, TN)

    # Hard boundary-condition constraint (h_boun2 == 0 term is dead, folded).
    x1 = x_aug[1:2, :]                                   # (1, TN) == x[:, 1:2] in torch
    h = (10.2 - x1) * (H_BOUN1 / 10.0) + (x1 - 0.2) * (x1 - 10.2) * out
    out_ref[...] = h.astype(out_ref.dtype)


def _round_up(v, m):
    return ((v + m - 1) // m) * m


def _select_tile(n, requested):
    """Pick the batch tile: multiple of 128, <= requested, and small enough
    that the grid has >= 2 steps when the batch allows it (v7x megacore)."""
    requested = max(128, _round_up(requested, 128))
    if n > 128:
        half_tile = _round_up((n + 1) // 2, 128)
        return max(128, min(requested, half_tile))
    return 128


def net_hardway(x, params, *, tile_n=8192, matmul_dtype=jnp.float32):
    """x: (N, 23) float32; params: list of (W (F_in,F_out), b (1,F_out)).

    Returns (N, 1) float32, matching the PyTorch module's forward.
    """
    N, F = x.shape
    assert F == LAYER_DIMS[0]

    tile = _select_tile(N, tile_n)
    n_pad = pl.cdiv(N, tile) * tile

    # Single fused pad of the transposed input:
    #  * row F (index 23) becomes the constant-ones row used to fold the
    #    layer-0 bias into the matmul,
    #  * columns N..n_pad-1 are batch padding that is sliced off at the end,
    #    so padding them with 1.0 as well is harmless.
    xT = jnp.pad(x.astype(jnp.float32).T, ((0, 1), (0, n_pad - N)),
                 constant_values=1.0)                    # (24, n_pad)

    # Layer 0: fold the bias as an extra column of the transposed weight.
    w0, b0 = params[0]
    w0T_aug = jnp.concatenate(
        [jnp.asarray(w0, jnp.float32).T,
         jnp.asarray(b0, jnp.float32).reshape(-1, 1)], axis=1)  # (50, 24)

    flat_params = [w0T_aug]
    in_specs = [pl.BlockSpec((F + 1, tile), lambda i: (0, i)),
                pl.BlockSpec(w0T_aug.shape, lambda i: (0, 0))]
    for (w, b) in params[1:]:
        wT = jnp.asarray(w, jnp.float32).T               # (F_out, F_in)
        bc = jnp.asarray(b, jnp.float32).reshape(-1, 1)  # (F_out, 1)
        flat_params += [wT, bc]
        in_specs.append(pl.BlockSpec(wT.shape, lambda i: (0, 0)))
        in_specs.append(pl.BlockSpec(bc.shape, lambda i: (0, 0)))

    kernel = functools.partial(net_hardway_kernel, matmul_dtype=matmul_dtype)

    out_t = pl.pallas_call(
        kernel,
        out_shape=jax.ShapeDtypeStruct((1, n_pad), jnp.float32),
        grid=(n_pad // tile,),
        in_specs=in_specs,
        out_specs=pl.BlockSpec((1, tile), lambda i: (0, i)),
        compiler_params=pltpu.CompilerParams(
            dimension_semantics=("parallel",),
            vmem_limit_bytes=32 * 1024 * 1024),
    )(xT, *flat_params)                                  # (1, n_pad)

    return out_t[:, :N].T                                # (N, 1)


def init_params(key):
    """Deterministic init matching torch.nn.Linear default U(-1/sqrt(fan_in), +)."""
    params = []
    for l in range(len(LAYER_DIMS) - 1):
        fan_in, fan_out = LAYER_DIMS[l], LAYER_DIMS[l + 1]
        key, kw, kb = jax.random.split(key, 3)
        bound = 1.0 / jnp.sqrt(fan_in)
        w = jax.random.uniform(kw, (fan_in, fan_out), jnp.float32, -bound, bound)
        b = jax.random.uniform(kb, (1, fan_out), jnp.float32, -bound, bound)
        params.append((w, b))
    return params


def net_hardway_ref(x, params):
    """Pure-JAX reference (mirrors the original, un-folded torch expression)."""
    a = x
    for l, (w, b) in enumerate(params):
        a = a @ w + b
        if l < len(params) - 1:
            a = a * jax.nn.sigmoid(a)
    x1 = x[:, 1:2]
    return ((x1 - 0.2) * H_BOUN2 / 10.0
            + (10.2 - x1) * H_BOUN1 / 10.0
            + (x1 - 0.2) * (x1 - 10.2) * a)


if __name__ == "__main__":
    key = jax.random.PRNGKey(0)
    key, kx = jax.random.split(key)

    # Small test batch; deliberately NOT a multiple of 128 to exercise the
    # wrapper-side padding.  The tile selector clamps the 8192 default down so
    # the grid has 2 steps (megacore path) at this small size.
    N = 300
    # x columns ~ physical inputs; column 1 is the spatial coord used by the
    # hard constraint, keep it in a plausible [0.2, 10.2] range.
    x = jax.random.uniform(kx, (N, 23), jnp.float32, 0.0, 1.0)
    x = x.at[:, 1].set(0.2 + 10.0 * x[:, 1])

    params = init_params(key)

    out = net_hardway(x, params)
    out = jax.block_until_ready(out)

    ref = net_hardway_ref(x, params)
    assert out.shape == (N, 1), out.shape
    # Slightly loosened vs 1e-4: kernel swish uses the tanh identity (EUP path)
    # while the reference uses sigmoid; mathematically identical, few-ulp diff.
    assert jnp.allclose(out, ref, atol=2e-4, rtol=2e-4), (out, ref)

    print("KERNEL_OK")
</pallas_src>

<mosaic_0001>
module attributes {stable_mosaic.version = 11 : i64} {
  func.func @net_hardway_kernel(%arg0: i32, %arg1: memref<24x256xf32, #tpu.memory_space<vmem>>, %arg2: memref<50x24xf32, #tpu.memory_space<vmem>>, %arg3: memref<50x50xf32, #tpu.memory_space<vmem>>, %arg4: memref<50x1xf32, #tpu.memory_space<vmem>>, %arg5: memref<50x50xf32, #tpu.memory_space<vmem>>, %arg6: memref<50x1xf32, #tpu.memory_space<vmem>>, %arg7: memref<50x50xf32, #tpu.memory_space<vmem>>, %arg8: memref<50x1xf32, #tpu.memory_space<vmem>>, %arg9: memref<50x50xf32, #tpu.memory_space<vmem>>, %arg10: memref<50x1xf32, #tpu.memory_space<vmem>>, %arg11: memref<50x50xf32, #tpu.memory_space<vmem>>, %arg12: memref<50x1xf32, #tpu.memory_space<vmem>>, %arg13: memref<50x50xf32, #tpu.memory_space<vmem>>, %arg14: memref<50x1xf32, #tpu.memory_space<vmem>>, %arg15: memref<1x50xf32, #tpu.memory_space<vmem>>, %arg16: memref<1x1xf32, #tpu.memory_space<vmem>>, %arg17: memref<1x256xf32, #tpu.memory_space<vmem>>) attributes {dimension_semantics = [#tpu.dimension_semantics<parallel>], iteration_bounds = array<i64: 2>, scalar_prefetch = 0 : i64, scratch_operands = 0 : i64, tpu.core_type = #tpu.core_type<tc>, window_params = [{transform_indices = @transform_0, window_bounds = array<i64: 24, 256>}, {pipeline_mode = #tpu.pipeline_mode<synchronous>, transform_indices = @transform_1, window_bounds = array<i64: 50, 24>}, {pipeline_mode = #tpu.pipeline_mode<synchronous>, transform_indices = @transform_2, window_bounds = array<i64: 50, 50>}, {pipeline_mode = #tpu.pipeline_mode<synchronous>, transform_indices = @transform_3, window_bounds = array<i64: 50, 1>}, {pipeline_mode = #tpu.pipeline_mode<synchronous>, transform_indices = @transform_4, window_bounds = array<i64: 50, 50>}, {pipeline_mode = #tpu.pipeline_mode<synchronous>, transform_indices = @transform_5, window_bounds = array<i64: 50, 1>}, {pipeline_mode = #tpu.pipeline_mode<synchronous>, transform_indices = @transform_6, window_bounds = array<i64: 50, 50>}, {pipeline_mode = #tpu.pipeline_mode<synchronous>, transform_indices = @transform_7, window_bounds = array<i64: 50, 1>}, {pipeline_mode = #tpu.pipeline_mode<synchronous>, transform_indices = @transform_8, window_bounds = array<i64: 50, 50>}, {pipeline_mode = #tpu.pipeline_mode<synchronous>, transform_indices = @transform_9, window_bounds = array<i64: 50, 1>}, {pipeline_mode = #tpu.pipeline_mode<synchronous>, transform_indices = @transform_10, window_bounds = array<i64: 50, 50>}, {pipeline_mode = #tpu.pipeline_mode<synchronous>, transform_indices = @transform_11, window_bounds = array<i64: 50, 1>}, {pipeline_mode = #tpu.pipeline_mode<synchronous>, transform_indices = @transform_12, window_bounds = array<i64: 50, 50>}, {pipeline_mode = #tpu.pipeline_mode<synchronous>, transform_indices = @transform_13, window_bounds = array<i64: 50, 1>}, {pipeline_mode = #tpu.pipeline_mode<synchronous>, transform_indices = @transform_14, window_bounds = array<i64: 1, 50>}, {pipeline_mode = #tpu.pipeline_mode<synchronous>, transform_indices = @transform_15, window_bounds = array<i64: 1, 1>}, {transform_indices = @transform_16, window_bounds = array<i64: 1, 256>}]} {
    %c0 = arith.constant 0 : index
    %c0_0 = arith.constant 0 : index
    %0 = vector.load %arg1[%c0, %c0_0] : memref<24x256xf32, #tpu.memory_space<vmem>>, vector<24x256xf32>
    %c0_1 = arith.constant 0 : index
    %c0_2 = arith.constant 0 : index
    %1 = vector.load %arg2[%c0_1, %c0_2] : memref<50x24xf32, #tpu.memory_space<vmem>>, vector<50x24xf32>
    %cst = arith.constant dense<0.000000e+00> : vector<50x256xf32>
    %2 = tpu.matmul %1, %0, %cst {dimension_numbers = #tpu.dot_dimension_numbers<[1], [0], [0], [1], [0, 0, 1, 1], [], []>} : vector<50x24xf32>, vector<24x256xf32>, vector<50x256xf32> -> vector<50x256xf32>
    %cst_3 = arith.constant 5.000000e-01 : f32
    %3 = vector.broadcast %cst_3 : f32 to vector<50x256xf32>
    %4 = arith.mulf %3, %2 : vector<50x256xf32>
    %cst_4 = arith.constant 5.000000e-01 : f32
    %5 = vector.broadcast %cst_4 : f32 to vector<50x256xf32>
    %6 = arith.mulf %5, %2 : vector<50x256xf32>
    %7 = math.tanh %6 : vector<50x256xf32>
    %cst_5 = arith.constant 1.000000e+00 : f32
    %8 = vector.broadcast %cst_5 : f32 to vector<50x256xf32>
    %9 = arith.addf %8, %7 : vector<50x256xf32>
    %10 = arith.mulf %4, %9 : vector<50x256xf32>
    %c0_6 = arith.constant 0 : index
    %c0_7 = arith.constant 0 : index
    %11 = vector.load %arg3[%c0_6, %c0_7] : memref<50x50xf32, #tpu.memory_space<vmem>>, vector<50x50xf32>
    %c0_8 = arith.constant 0 : index
    %c0_9 = arith.constant 0 : index
    %12 = vector.load %arg4[%c0_8, %c0_9] : memref<50x1xf32, #tpu.memory_space<vmem>>, vector<50x1xf32>
    %cst_10 = arith.constant dense<0.000000e+00> : vector<50x256xf32>
    %13 = tpu.matmul %11, %10, %cst_10 {dimension_numbers = #tpu.dot_dimension_numbers<[1], [0], [0], [1], [0, 0, 1, 1], [], []>} : vector<50x50xf32>, vector<50x256xf32>, vector<50x256xf32> -> vector<50x256xf32>
    %14 = vector.broadcast %12 : vector<50x1xf32> to vector<50x256xf32>
    %15 = arith.addf %13, %14 : vector<50x256xf32>
    %cst_11 = arith.constant 5.000000e-01 : f32
    %16 = vector.broadcast %cst_11 : f32 to vector<50x256xf32>
    %17 = arith.mulf %16, %15 : vector<50x256xf32>
    %cst_12 = arith.constant 5.000000e-01 : f32
    %18 = vector.broadcast %cst_12 : f32 to vector<50x256xf32>
    %19 = arith.mulf %18, %15 : vector<50x256xf32>
    %20 = math.tanh %19 : vector<50x256xf32>
    %cst_13 = arith.constant 1.000000e+00 : f32
    %21 = vector.broadcast %cst_13 : f32 to vector<50x256xf32>
    %22 = arith.addf %21, %20 : vector<50x256xf32>
    %23 = arith.mulf %17, %22 : vector<50x256xf32>
    %c0_14 = arith.constant 0 : index
    %c0_15 = arith.constant 0 : index
    %24 = vector.load %arg5[%c0_14, %c0_15] : memref<50x50xf32, #tpu.memory_space<vmem>>, vector<50x50xf32>
    %c0_16 = arith.constant 0 : index
    %c0_17 = arith.constant 0 : index
    %25 = vector.load %arg6[%c0_16, %c0_17] : memref<50x1xf32, #tpu.memory_space<vmem>>, vector<50x1xf32>
    %cst_18 = arith.constant dense<0.000000e+00> : vector<50x256xf32>
    %26 = tpu.matmul %24, %23, %cst_18 {dimension_numbers = #tpu.dot_dimension_numbers<[1], [0], [0], [1], [0, 0, 1, 1], [], []>} : vector<50x50xf32>, vector<50x256xf32>, vector<50x256xf32> -> vector<50x256xf32>
    %27 = vector.broadcast %25 : vector<50x1xf32> to vector<50x256xf32>
    %28 = arith.addf %26, %27 : vector<50x256xf32>
    %cst_19 = arith.constant 5.000000e-01 : f32
    %29 = vector.broadcast %cst_19 : f32 to vector<50x256xf32>
    %30 = arith.mulf %29, %28 : vector<50x256xf32>
    %cst_20 = arith.constant 5.000000e-01 : f32
    %31 = vector.broadcast %cst_20 : f32 to vector<50x256xf32>
    %32 = arith.mulf %31, %28 : vector<50x256xf32>
    %33 = math.tanh %32 : vector<50x256xf32>
    %cst_21 = arith.constant 1.000000e+00 : f32
    %34 = vector.broadcast %cst_21 : f32 to vector<50x256xf32>
    %35 = arith.addf %34, %33 : vector<50x256xf32>
    %36 = arith.mulf %30, %35 : vector<50x256xf32>
    %c0_22 = arith.constant 0 : index
    %c0_23 = arith.constant 0 : index
    %37 = vector.load %arg7[%c0_22, %c0_23] : memref<50x50xf32, #tpu.memory_space<vmem>>, vector<50x50xf32>
    %c0_24 = arith.constant 0 : index
    %c0_25 = arith.constant 0 : index
    %38 = vector.load %arg8[%c0_24, %c0_25] : memref<50x1xf32, #tpu.memory_space<vmem>>, vector<50x1xf32>
    %cst_26 = arith.constant dense<0.000000e+00> : vector<50x256xf32>
    %39 = tpu.matmul %37, %36, %cst_26 {dimension_numbers = #tpu.dot_dimension_numbers<[1], [0], [0], [1], [0, 0, 1, 1], [], []>} : vector<50x50xf32>, vector<50x256xf32>, vector<50x256xf32> -> vector<50x256xf32>
    %40 = vector.broadcast %38 : vector<50x1xf32> to vector<50x256xf32>
    %41 = arith.addf %39, %40 : vector<50x256xf32>
    %cst_27 = arith.constant 5.000000e-01 : f32
    %42 = vector.broadcast %cst_27 : f32 to vector<50x256xf32>
    %43 = arith.mulf %42, %41 : vector<50x256xf32>
    %cst_28 = arith.constant 5.000000e-01 : f32
    %44 = vector.broadcast %cst_28 : f32 to vector<50x256xf32>
    %45 = arith.mulf %44, %41 : vector<50x256xf32>
    %46 = math.tanh %45 : vector<50x256xf32>
    %cst_29 = arith.constant 1.000000e+00 : f32
    %47 = vector.broadcast %cst_29 : f32 to vector<50x256xf32>
    %48 = arith.addf %47, %46 : vector<50x256xf32>
    %49 = arith.mulf %43, %48 : vector<50x256xf32>
    %c0_30 = arith.constant 0 : index
    %c0_31 = arith.constant 0 : index
    %50 = vector.load %arg9[%c0_30, %c0_31] : memref<50x50xf32, #tpu.memory_space<vmem>>, vector<50x50xf32>
    %c0_32 = arith.constant 0 : index
    %c0_33 = arith.constant 0 : index
    %51 = vector.load %arg10[%c0_32, %c0_33] : memref<50x1xf32, #tpu.memory_space<vmem>>, vector<50x1xf32>
    %cst_34 = arith.constant dense<0.000000e+00> : vector<50x256xf32>
    %52 = tpu.matmul %50, %49, %cst_34 {dimension_numbers = #tpu.dot_dimension_numbers<[1], [0], [0], [1], [0, 0, 1, 1], [], []>} : vector<50x50xf32>, vector<50x256xf32>, vector<50x256xf32> -> vector<50x256xf32>
    %53 = vector.broadcast %51 : vector<50x1xf32> to vector<50x256xf32>
    %54 = arith.addf %52, %53 : vector<50x256xf32>
    %cst_35 = arith.constant 5.000000e-01 : f32
    %55 = vector.broadcast %cst_35 : f32 to vector<50x256xf32>
    %56 = arith.mulf %55, %54 : vector<50x256xf32>
    %cst_36 = arith.constant 5.000000e-01 : f32
    %57 = vector.broadcast %cst_36 : f32 to vector<50x256xf32>
    %58 = arith.mulf %57, %54 : vector<50x256xf32>
    %59 = math.tanh %58 : vector<50x256xf32>
    %cst_37 = arith.constant 1.000000e+00 : f32
    %60 = vector.broadcast %cst_37 : f32 to vector<50x256xf32>
    %61 = arith.addf %60, %59 : vector<50x256xf32>
    %62 = arith.mulf %56, %61 : vector<50x256xf32>
    %c0_38 = arith.constant 0 : index
    %c0_39 = arith.constant 0 : index
    %63 = vector.load %arg11[%c0_38, %c0_39] : memref<50x50xf32, #tpu.memory_space<vmem>>, vector<50x50xf32>
    %c0_40 = arith.constant 0 : index
    %c0_41 = arith.constant 0 : index
    %64 = vector.load %arg12[%c0_40, %c0_41] : memref<50x1xf32, #tpu.memory_space<vmem>>, vector<50x1xf32>
    %cst_42 = arith.constant dense<0.000000e+00> : vector<50x256xf32>
    %65 = tpu.matmul %63, %62, %cst_42 {dimension_numbers = #tpu.dot_dimension_numbers<[1], [0], [0], [1], [0, 0, 1, 1], [], []>} : vector<50x50xf32>, vector<50x256xf32>, vector<50x256xf32> -> vector<50x256xf32>
    %66 = vector.broadcast %64 : vector<50x1xf32> to vector<50x256xf32>
    %67 = arith.addf %65, %66 : vector<50x256xf32>
    %cst_43 = arith.constant 5.000000e-01 : f32
    %68 = vector.broadcast %cst_43 : f32 to vector<50x256xf32>
    %69 = arith.mulf %68, %67 : vector<50x256xf32>
    %cst_44 = arith.constant 5.000000e-01 : f32
    %70 = vector.broadcast %cst_44 : f32 to vector<50x256xf32>
    %71 = arith.mulf %70, %67 : vector<50x256xf32>
    %72 = math.tanh %71 : vector<50x256xf32>
    %cst_45 = arith.constant 1.000000e+00 : f32
    %73 = vector.broadcast %cst_45 : f32 to vector<50x256xf32>
    %74 = arith.addf %73, %72 : vector<50x256xf32>
    %75 = arith.mulf %69, %74 : vector<50x256xf32>
    %c0_46 = arith.constant 0 : index
    %c0_47 = arith.constant 0 : index
    %76 = vector.load %arg13[%c0_46, %c0_47] : memref<50x50xf32, #tpu.memory_space<vmem>>, vector<50x50xf32>
    %c0_48 = arith.constant 0 : index
    %c0_49 = arith.constant 0 : index
    %77 = vector.load %arg14[%c0_48, %c0_49] : memref<50x1xf32, #tpu.memory_space<vmem>>, vector<50x1xf32>
    %cst_50 = arith.constant dense<0.000000e+00> : vector<50x256xf32>
    %78 = tpu.matmul %76, %75, %cst_50 {dimension_numbers = #tpu.dot_dimension_numbers<[1], [0], [0], [1], [0, 0, 1, 1], [], []>} : vector<50x50xf32>, vector<50x256xf32>, vector<50x256xf32> -> vector<50x256xf32>
    %79 = vector.broadcast %77 : vector<50x1xf32> to vector<50x256xf32>
    %80 = arith.addf %78, %79 : vector<50x256xf32>
    %cst_51 = arith.constant 5.000000e-01 : f32
    %81 = vector.broadcast %cst_51 : f32 to vector<50x256xf32>
    %82 = arith.mulf %81, %80 : vector<50x256xf32>
    %cst_52 = arith.constant 5.000000e-01 : f32
    %83 = vector.broadcast %cst_52 : f32 to vector<50x256xf32>
    %84 = arith.mulf %83, %80 : vector<50x256xf32>
    %85 = math.tanh %84 : vector<50x256xf32>
    %cst_53 = arith.constant 1.000000e+00 : f32
    %86 = vector.broadcast %cst_53 : f32 to vector<50x256xf32>
    %87 = arith.addf %86, %85 : vector<50x256xf32>
    %88 = arith.mulf %82, %87 : vector<50x256xf32>
    %c0_54 = arith.constant 0 : index
    %c0_55 = arith.constant 0 : index
    %89 = vector.load %arg15[%c0_54, %c0_55] : memref<1x50xf32, #tpu.memory_space<vmem>>, vector<1x50xf32>
    %c0_56 = arith.constant 0 : index
    %c0_57 = arith.constant 0 : index
    %90 = vector.load %arg16[%c0_56, %c0_57] : memref<1x1xf32, #tpu.memory_space<vmem>>, vector<1x1xf32>
    %cst_58 = arith.constant dense<0.000000e+00> : vector<1x256xf32>
    %91 = tpu.matmul %89, %88, %cst_58 {dimension_numbers = #tpu.dot_dimension_numbers<[1], [0], [0], [1], [0, 0, 1, 1], [], []>} : vector<1x50xf32>, vector<50x256xf32>, vector<1x256xf32> -> vector<1x256xf32>
    %92 = vector.broadcast %90 : vector<1x1xf32> to vector<1x256xf32>
    %93 = arith.addf %91, %92 : vector<1x256xf32>
    %94 = vector.extract_strided_slice %0 {offsets = [1, 0], sizes = [1, 256], strides = [1, 1]} : vector<24x256xf32> to vector<1x256xf32>
    %cst_59 = arith.constant 1.020000e+01 : f32
    %95 = vector.broadcast %cst_59 : f32 to vector<1x256xf32>
    %96 = arith.subf %95, %94 : vector<1x256xf32>
    %cst_60 = arith.constant 1.000000e-01 : f32
    %97 = vector.broadcast %cst_60 : f32 to vector<1x256xf32>
    %98 = arith.mulf %96, %97 : vector<1x256xf32>
    %cst_61 = arith.constant 2.000000e-01 : f32
    %99 = vector.broadcast %cst_61 : f32 to vector<1x256xf32>
    %100 = arith.subf %94, %99 : vector<1x256xf32>
    %cst_62 = arith.constant 1.020000e+01 : f32
    %101 = vector.broadcast %cst_62 : f32 to vector<1x256xf32>
    %102 = arith.subf %94, %101 : vector<1x256xf32>
    %103 = arith.mulf %100, %102 : vector<1x256xf32>
    %104 = arith.mulf %103, %93 : vector<1x256xf32>
    %105 = arith.addf %98, %104 : vector<1x256xf32>
    %c0_63 = arith.constant 0 : index
    %c0_64 = arith.constant 0 : index
    %106 = vector.load %arg17[%c0_63, %c0_64] : memref<1x256xf32, #tpu.memory_space<vmem>>, vector<1x256xf32>
    tpu.vector_store %arg17[%c0_63, %c0_64], %105 {strides = array<i32>} : memref<1x256xf32, #tpu.memory_space<vmem>>, vector<1x256xf32>,
    return
  }
  func.func @transform_0(%arg0: i32) -> (i32, i32) {
    %c0_i32 = arith.constant 0 : i32
    %c0_i32_0 = arith.constant 0 : i32
    return %c0_i32, %arg0 : i32, i32
  }
  func.func @transform_1(%arg0: i32) -> (i32, i32) {
    %c0_i32 = arith.constant 0 : i32
    %c0_i32_0 = arith.constant 0 : i32
    %c0_i32_1 = arith.constant 0 : i32
    return %c0_i32, %c0_i32_0 : i32, i32
  }
  func.func @transform_2(%arg0: i32) -> (i32, i32) {
    %c0_i32 = arith.constant 0 : i32
    %c0_i32_0 = arith.constant 0 : i32
    %c0_i32_1 = arith.constant 0 : i32
    return %c0_i32, %c0_i32_0 : i32, i32
  }
  func.func @transform_3(%arg0: i32) -> (i32, i32) {
    %c0_i32 = arith.constant 0 : i32
    %c0_i32_0 = arith.constant 0 : i32
    %c0_i32_1 = arith.constant 0 : i32
    return %c0_i32, %c0_i32_0 : i32, i32
  }
  func.func @transform_4(%arg0: i32) -> (i32, i32) {
    %c0_i32 = arith.constant 0 : i32
    %c0_i32_0 = arith.constant 0 : i32
    %c0_i32_1 = arith.constant 0 : i32
    return %c0_i32, %c0_i32_0 : i32, i32
  }
  func.func @transform_5(%arg0: i32) -> (i32, i32) {
    %c0_i32 = arith.constant 0 : i32
    %c0_i32_0 = arith.constant 0 : i32
    %c0_i32_1 = arith.constant 0 : i32
    return %c0_i32, %c0_i32_0 : i32, i32
  }
  func.func @transform_6(%arg0: i32) -> (i32, i32) {
    %c0_i32 = arith.constant 0 : i32
    %c0_i32_0 = arith.constant 0 : i32
    %c0_i32_1 = arith.constant 0 : i32
    return %c0_i32, %c0_i32_0 : i32, i32
  }
  func.func @transform_7(%arg0: i32) -> (i32, i32) {
    %c0_i32 = arith.constant 0 : i32
    %c0_i32_0 = arith.constant 0 : i32
    %c0_i32_1 = arith.constant 0 : i32
    return %c0_i32, %c0_i32_0 : i32, i32
  }
  func.func @transform_8(%arg0: i32) -> (i32, i32) {
    %c0_i32 = arith.constant 0 : i32
    %c0_i32_0 = arith.constant 0 : i32
    %c0_i32_1 = arith.constant 0 : i32
    return %c0_i32, %c0_i32_0 : i32, i32
  }
  func.func @transform_9(%arg0: i32) -> (i32, i32) {
    %c0_i32 = arith.constant 0 : i32
    %c0_i32_0 = arith.constant 0 : i32
    %c0_i32_1 = arith.constant 0 : i32
    return %c0_i32, %c0_i32_0 : i32, i32
  }
  func.func @transform_10(%arg0: i32) -> (i32, i32) {
    %c0_i32 = arith.constant 0 : i32
    %c0_i32_0 = arith.constant 0 : i32
    %c0_i32_1 = arith.constant 0 : i32
    return %c0_i32, %c0_i32_0 : i32, i32
  }
  func.func @transform_11(%arg0: i32) -> (i32, i32) {
    %c0_i32 = arith.constant 0 : i32
    %c0_i32_0 = arith.constant 0 : i32
    %c0_i32_1 = arith.constant 0 : i32
    return %c0_i32, %c0_i32_0 : i32, i32
  }
  func.func @transform_12(%arg0: i32) -> (i32, i32) {
    %c0_i32 = arith.constant 0 : i32
    %c0_i32_0 = arith.constant 0 : i32
    %c0_i32_1 = arith.constant 0 : i32
    return %c0_i32, %c0_i32_0 : i32, i32
  }
  func.func @transform_13(%arg0: i32) -> (i32, i32) {
    %c0_i32 = arith.constant 0 : i32
    %c0_i32_0 = arith.constant 0 : i32
    %c0_i32_1 = arith.constant 0 : i32
    return %c0_i32, %c0_i32_0 : i32, i32
  }
  func.func @transform_14(%arg0: i32) -> (i32, i32) {
    %c0_i32 = arith.constant 0 : i32
    %c0_i32_0 = arith.constant 0 : i32
    %c0_i32_1 = arith.constant 0 : i32
    return %c0_i32, %c0_i32_0 : i32, i32
  }
  func.func @transform_15(%arg0: i32) -> (i32, i32) {
    %c0_i32 = arith.constant 0 : i32
    %c0_i32_0 = arith.constant 0 : i32
    %c0_i32_1 = arith.constant 0 : i32
    return %c0_i32, %c0_i32_0 : i32, i32
  }
  func.func @transform_16(%arg0: i32) -> (i32, i32) {
    %c0_i32 = arith.constant 0 : i32
    %c0_i32_0 = arith.constant 0 : i32
    return %c0_i32, %arg0 : i32, i32
  }
}

</mosaic_0001>

<bundles_post_ra>
// kernel: tpu_custom_call.1
= control target key start
LH: loop header
LB: loop body
LE: loop exit
PB: predicated region body
PF: predicated region fallthrough
CT: control target
= control target key end

     0   :  { %s3547_s0 = inlined_call_operand.vmem [shape: f32[24,512], index: 0, kind: input, shape index: {}]   ;;  %s3548_s1 = inlined_call_operand.vmem [shape: f32[50,24], index: 1, kind: input, shape index: {}]   ;;  %s3549_s2 = inlined_call_operand.vmem [shape: f32[50,50], index: 2, kind: input, shape index: {}]   ;;  %s3550_s3 = inlined_call_operand.vmem [shape: f32[50,1], index: 3, kind: input, shape index: {}]   ;;  %s3551_s4 = inlined_call_operand.vmem [shape: f32[50,50], index: 4, kind: input, shape index: {}]   ;;  %s3552_s5 = inlined_call_operand.vmem [shape: f32[50,1], index: 5, kind: input, shape index: {}]   ;;  %s3553_s6 = inlined_call_operand.vmem [shape: f32[50,50], index: 6, kind: input, shape index: {}]   ;;  %s3554_s7 = inlined_call_operand.vmem [shape: f32[50,1], index: 7, kind: input, shape index: {}]   ;;  %s3555_s8 = inlined_call_operand.vmem [shape: f32[50,50], index: 8, kind: input, shape index: {}]   ;;  %s3556_s9 = inlined_call_operand.vmem [shape: f32[50,1], index: 9, kind: input, shape index: {}]   ;;  %s3557_s10 = inlined_call_operand.vmem [shape: f32[50,50], index: 10, kind: input, shape index: {}]   ;;  %s3558_s11 = inlined_call_operand.vmem [shape: f32[50,1], index: 11, kind: input, shape index: {}]   ;;  %s3559_s12 = inlined_call_operand.vmem [shape: f32[50,50], index: 12, kind: input, shape index: {}]   ;;  %s3560_s13 = inlined_call_operand.vmem [shape: f32[50,1], index: 13, kind: input, shape index: {}]   ;;  %s3561_s14 = inlined_call_operand.vmem [shape: f32[1,50], index: 14, kind: input, shape index: {}]   ;;  %s3562_s15 = inlined_call_operand.<no memory space> [shape: f32[1,1], index: 15, kind: input, shape index: {}]   ;;  %s3563_s16 = inlined_call_operand.hbm [shape: f32[1,512], index: 16, kind: output, shape index: {}]  }
   0x1   :  { %3567 = sst [smem:[#allocation10_spill]] %s3547_s0  ;;  %v21_v0 = vstv %s3562_s15 }
   0x2   :  { %3568 = sst [smem:[#allocation11_spill]] %s3548_s1  ;;  %22 = vst [vmem:[#allocation2] sm:$0x1] %v21_v0 }
   0x3   :  { %23 = vsyncpa [#allocation5], 0 }
   0x4   :  { %25 = vsyncpa [#allocation5 + $0x1], 0  ;;  %s2977_s23 = smov 0   ;;  %s2979_s24 = smov 0  }
   0x5   :  { %s2981_s25 = smov 0   ;;  %s2983_s26 = smov 0  }
   0x6 LB: > { %3569 = sst [smem:[#allocation7_spill]] %s2875_s24  ;;  %s3564_s15 = sadd.s32 4294967295, %s2883_s26   ;;  %s2883_s26 = sphi %s2983_s26, %s3580_s26   ;;  %s2879_s25 = sphi %s2981_s25, %s3579_s25   ;;  %s2875_s24 = sphi %s2979_s24, %s3578_s24   ;;  %s2871_s23 = sphi %s2977_s23, %s3577_s23  }
   0x7   : > { %3570 = sst [smem:[#allocation8_spill]] %s2879_s25  ;;  %s2403_s27 = sadd.s32 4294967294, %s2883_s26  }
   0x8   : > { %s3000_s28 = sadd.s32 1, %s2883_s26   ;;  %s38_s29 = sadd.s32 1, %s2879_s25 }
   0x9   : > { %s35_s30 = ssub.s32 %s2883_s26, %s3000_s28  ;;  %p45_p0 = scmp.ne.s32.totalorder %s2879_s25, %s2875_s24 }
   0xa   : > { %p36_p1 = scmp.eq.s32.totalorder %s35_s30, 0  ;;  %p46_p2 = scmp.eq.s32.totalorder %s2883_s26, 0 }
   0xb   : > { %p390_p3 = scmp.eq.s32.totalorder %s3564_s15, 1  ;;  %p395_p4 = scmp.ne.s32.totalorder %s2875_s24, %s2871_s23 }
   0xc   : > { %s3013_s0 = scalar_select %p36_p1, %s2879_s25, %s38_s29  }
   0xd   : > { %p47_p5 = por %p46_p2, %p45_p0  ;;  %p3015_p6 = por %p390_p3, %p45_p0 }
   0xe   : > { %3571 = sst [smem:[#allocation9_spill]] %s3013_s0  ;;  %p396_p7 = scmp.eq.s32.totalorder %s2403_s27, 1 }
   0xf   : > { %p2405_p9 = scmp.ge.s32.totalorder %s2883_s26, 2 }
  0x10   : > { %p3019_p8 = por %p396_p7, %p395_p4 }
  0x11   : > { %457 = sbr.rel (%p2405_p9) target bundleno = 37 (0x25), region = 76 }
  0x18   : > { %460 = sbr.rel (!%p47_p5) target bundleno = 37 (0x25), region = 80  ;;  %s462_s19 = sand.u32 (%p47_p5), 1, %s2879_s25  }
  0x19   : > { %s2483_s20 = sshll.u32 (%p47_p5), %s2883_s26, 4  ;;  %s2577_s21 = smul.u32 (%p47_p5), 48, %s462_s19 }
  0x1a   : > { %s3574_s30 = sld [smem:[#allocation10_spill]] (%p47_p5) }
  0x1b   : > { %s464_s27 = scalar_lea.vmem (%p47_p5), [#allocation3], %s2577_s21 }
  0x20   : > { %s467_s15 = scalar_lea.vmem %s3574_s30, %s2483_s20 }
  0x21   : > { %v480_v1 = vld [vmem:[%s467_s15] sm:$0xff]  ;;  %v482_v2 = vld [vmem:[%s467_s15 + $0x8] sm:$0xff] }
  0x22   : > { %v484_v3 = vld [vmem:[%s467_s15 + $0x20] sm:$0xff]  ;;  %v486_v4 = vld [vmem:[%s467_s15 + $0x28] sm:$0xff]  ;;  %481 = vst [vmem:[%s464_s27] sm:$0xff] %v480_v1  ;;  %483 = vst [vmem:[%s464_s27 + $0x8] sm:$0xff] %v482_v2 }
  0x23   : > { %v488_v5 = vld [vmem:[%s467_s15 + $0x40] sm:$0xff]  ;;  %v490_v6 = vld [vmem:[%s467_s15 + $0x48] sm:$0xff]  ;;  %485 = vst [vmem:[%s464_s27 + $0x10] sm:$0xff] %v484_v3  ;;  %487 = vst [vmem:[%s464_s27 + $0x18] sm:$0xff] %v486_v4 }
  0x24   : > { %489 = vst [vmem:[%s464_s27 + $0x20] sm:$0xff] %v488_v5  ;;  %491 = vst [vmem:[%s464_s27 + $0x28] sm:$0xff] %v490_v6 }
  0x25 PF: > { %p2408_p10 = scmp.ge.s32.totalorder %s2883_s26, 1  ;;  %p496_p11 = scmp.lt.s32.totalorder %s2883_s26, 3 }
  0x27   : > { %p497_p12 = pnand %p2408_p10, %p496_p11 }
  0x28   : > { %s3034_s19 = sand.u32 (!%p497_p12), 1, %s2875_s24   ;;  %v2885_v7 = vmov (!%p497_p12), 0.0   ;;  %s3575_s1 = sld [smem:[#allocation11_spill]] (!%p497_p12)  ;;  %vm567_vm0 = vcmask (!%p497_p12), 195584   ;;  %v2886_v23 = vmov (!%p497_p12), 0   ;;  %v759_v24 = vld [vmem:[%s3550_s3] sm:$0xff] (!%p497_p12) }
  0x29   : > { %500 = sbr.rel (%p497_p12) target bundleno = 2111 (0x83f), region = 103  ;;  %653 = vmatprep.mubr.f32.mxu0 (!%p497_p12), %v2885_v7  ;;  %677 = vmatprep.mubr.f32.mxu1 (!%p497_p12), %v2885_v7  ;;  %v760_v25 = vld [vmem:[%s3550_s3 + $0x8] sm:$0xff] (!%p497_p12)  ;;  %v761_v26 = vld [vmem:[%s3550_s3 + $0x10] sm:$0xff] (!%p497_p12)  ;;  %v763_v27 = vld [vmem:[%s3550_s3 + $0x20] sm:$0xff] (!%p497_p12)  ;;  %vm823_vm1 = vcmask (!%p497_p12), 1041408   ;;  %vm801_vm2 = vcmask (!%p497_p12), 408576  }
  0x2a   : > { %s2578_s15 = smul.u32 (!%p497_p12), 48, %s3034_s19  ;;  %2621 = vset.pattern.permute.xlu0 (!%p497_p12), %v2886_v23  ;;  %2622 = vset.pattern.permute.xlu1 (!%p497_p12), %v2886_v23  ;;  %v762_v28 = vld [vmem:[%s3550_s3 + $0x18] sm:$0xff] (!%p497_p12)  ;;  %v765_v29 = vld [vmem:[%s3550_s3 + $0x30] sm:$0x3] (!%p497_p12)  ;;  %v764_v30 = vld [vmem:[%s3550_s3 + $0x28] sm:$0xff] (!%p497_p12)  ;;  %s3576_s25 = sadd.s32 (!%p497_p12), 4294967295, %s2883_s26  }
  0x2b   : > { %768 = vperm.xlu0 (!%p497_p12), %2621, %v759_v24   ;;  %778 = vperm.xlu1 (!%p497_p12), %2622, %v761_v26   ;;  %v1001_v31 = vld [vmem:[%s3552_s5 + $0x8] sm:$0xff] (!%p497_p12)  ;;  %v1000_v32 = vld [vmem:[%s3552_s5] sm:$0xff] (!%p497_p12)  ;;  %v1003_v33 = vld [vmem:[%s3552_s5 + $0x18] sm:$0xff] (!%p497_p12)  ;;  %s2484_s0 = sshll.u32 (!%p497_p12), %s3576_s25, 5  ;;  %s2888_s24 = smov (!%p497_p12), [#allocation4]  }
  0x2c   : > { %s3039_s20 = scalar_lea.vmem (!%p497_p12), [#allocation3], %s2578_s15  ;;  %v1002_v34 = vld [vmem:[%s3552_s5 + $0x10] sm:$0xff] (!%p497_p12)  ;;  %v1005_v35 = vld [vmem:[%s3552_s5 + $0x28] sm:$0xff] (!%p497_p12)  ;;  %v1004_v36 = vld [vmem:[%s3552_s5 + $0x20] sm:$0xff] (!%p497_p12)  ;;  %s3503_s27 = scalar_lea.hbm (!%p497_p12), %s3563_s16, %s2484_s0 }
  0x2d   : > { %v555_v8 = vld [vmem:[%s3039_s20 + $0x8] sm:$0xff] (!%p497_p12)  ;;  %v557_v9 = vld [vmem:[%s3039_s20 + $0x18] sm:$0xff] (!%p497_p12)  ;;  %v554_v10 = vld [vmem:[%s3039_s20] sm:$0xff] (!%p497_p12)  ;;  %s2324_s15 = scalar_lea.sflag (!%p497_p12), [#allocation5], %s3034_s19 }
  0x2e   : > { %v2485_v11 = vpack.c.bf16 (!%p497_p12), %v557_v9, %v555_v8  ;;  %v556_v12 = vld [vmem:[%s3039_s20 + $0x10] sm:$0xff] (!%p497_p12)  ;;  %v559_v14 = vld [vmem:[%s3039_s20 + $0x28] sm:$0xff] (!%p497_p12)  ;;  %v558_v15 = vld [vmem:[%s3039_s20 + $0x20] sm:$0xff] (!%p497_p12) }
  0x2f   : > { %v2487_v13 = vpack.c.bf16 (!%p497_p12), %v556_v12, %v554_v10  ;;  %v560_v16 = vld [vmem:[%s3575_s1] sm:$0xff] (!%p497_p12)  ;;  %v561_v18 = vld [vmem:[%s3575_s1 + $0x8] sm:$0xff] (!%p497_p12)  ;;  %v562_v20 = vld [vmem:[%s3575_s1 + $0x10] sm:$0xff] (!%p497_p12)  ;;  %773 = vperm.xlu0 (!%p497_p12), %2621, %v760_v25   ;;  %783 = vperm.xlu1 (!%p497_p12), %2622, %v762_v28  }
  0x30   : > { %2486 = vmatprep.subr.bf16.mxu0 %v2485_v11  ;;  %2573 = vmatprep.subr.bf16.mxu1 %v2485_v11  ;;  %v564_v17 = vld [vmem:[%s3575_s1 + $0x20] sm:$0xff]  ;;  %v565_v19 = vld [vmem:[%s3575_s1 + $0x28] sm:$0xff]  ;;  %v566_v21 = vld [vmem:[%s3575_s1 + $0x30] sm:$0x3] }
  0x31   : > { %2488 = vmatpush1.bf16.msra.mxu0 %v2487_v13  ;;  %2575 = vmatpush1.bf16.msra.mxu1 %v2487_v13  ;;  %v563_v22 = vld [vmem:[%s3575_s1 + $0x18] sm:$0xff]  ;;  %v1239_v37 = vld [vmem:[%s3554_s7] sm:$0xff]  ;;  %v1006_v38 = vld [vmem:[%s3552_s5 + $0x30] sm:$0x3] }
  0x32   : > { %593 = vmatprep.subr.mxu0 %v559_v14  ;;  %2574 = vmatprep.subr.mxu1 %v559_v14  ;;  %v1241_v39 = vld [vmem:[%s3554_s7 + $0x10] sm:$0xff]  ;;  %v1240_v40 = vld [vmem:[%s3554_s7 + $0x8] sm:$0xff]  ;;  %v1243_v41 = vld [vmem:[%s3554_s7 + $0x20] sm:$0xff] }
  0x33   : > { %788 = vperm.xlu0 %2621, %v763_v27   ;;  %793 = vperm.xlu1 %2622, %v764_v30   ;;  %v1242_v42 = vld [vmem:[%s3554_s7 + $0x18] sm:$0xff]  ;;  %v1245_v43 = vld [vmem:[%s3554_s7 + $0x30] sm:$0x3]  ;;  %v1244_v44 = vld [vmem:[%s3554_s7 + $0x28] sm:$0xff] }
  0x34   : > { %v1479_v45 = vld [vmem:[%s3556_s9 + $0x8] sm:$0xff]  ;;  %v1478_v46 = vld [vmem:[%s3556_s9] sm:$0xff]  ;;  %v1481_v47 = vld [vmem:[%s3556_s9 + $0x18] sm:$0xff] }
  0x35   : > { %594 = vmatpush1.msra.mxu0 %v558_v15  ;;  %2576 = vmatpush1.msra.mxu1 %v558_v15  ;;  %v1480_v48 = vld [vmem:[%s3556_s9 + $0x10] sm:$0xff]  ;;  %v1483_v49 = vld [vmem:[%s3556_s9 + $0x28] sm:$0xff]  ;;  %v1482_v50 = vld [vmem:[%s3556_s9 + $0x20] sm:$0xff] }
  0x36   : > { %2410 = vmatmul.mubr.msk.f32.vlgmr.msra.gmra.mrb[0].mxu0 %vm567_vm0, %v560_v16  ;;  %2414 = vmatmul.mubr.msk.f32.vlgmr.msra.gmra.mrb[0].mxu1 %vm567_vm0, %v564_v17  ;;  %v1717_v51 = vld [vmem:[%s3558_s11] sm:$0xff]  ;;  %v1484_v52 = vld [vmem:[%s3556_s9 + $0x30] sm:$0x3]  ;;  %v1718_v54 = vld [vmem:[%s3558_s11 + $0x8] sm:$0xff] }
  0x37   : > { %659 = vmatprep.mubr.f32.mxu0 %v2885_v7  ;;  %683 = vmatprep.mubr.f32.mxu1 %v2885_v7  ;;  %v1719_v53 = vld [vmem:[%s3558_s11 + $0x10] sm:$0xff]  ;;  %v1721_v55 = vld [vmem:[%s3558_s11 + $0x20] sm:$0xff]  ;;  %v1720_v56 = vld [vmem:[%s3558_s11 + $0x18] sm:$0xff] }
  0x38   : > { %798 = vperm.xlu0 %2621, %v765_v29   ;;  %1009 = vperm.xlu1 %2622, %v1000_v32   ;;  %v1723_v57 = vld [vmem:[%s3558_s11 + $0x30] sm:$0x3]  ;;  %v1722_v58 = vld [vmem:[%s3558_s11 + $0x28] sm:$0xff]  ;;  %v1956_v60 = vld [vmem:[%s3560_s13] sm:$0xff] }
  0x39   : > { %v1957_v59 = vld [vmem:[%s3560_s13 + $0x8] sm:$0xff]  ;;  %v1959_v61 = vld [vmem:[%s3560_s13 + $0x18] sm:$0xff]  ;;  %v1958_v4 = vld [vmem:[%s3560_s13 + $0x10] sm:$0xff] }
  0x3a   : > { %2411 = vmatmul.mubr.msk.f32.gmra.mrb[2].mxu0 %vm567_vm0, %v561_v18  ;;  %2415 = vmatmul.mubr.msk.f32.gmra.mrb[2].mxu1 %vm567_vm0, %v565_v19  ;;  %v1961_v5 = vld [vmem:[%s3560_s13 + $0x28] sm:$0xff]  ;;  %v1960_v11 = vld [vmem:[%s3560_s13 + $0x20] sm:$0xff]  ;;  %v1962_v24 = vld [vmem:[%s3560_s13 + $0x30] sm:$0x3] }
  0x3b   : > { %665 = vmatprep.mubr.f32.mxu0 %v2885_v7  ;;  %689 = vmatprep.mubr.f32.mxu1 %v2885_v7  ;;  %v2189_v16 = vld [vmem:[#allocation2] sm:$0x1] }
  0x3c   : > { %1014 = vperm.xlu0 %2621, %v1001_v31   ;;  %1019 = vperm.xlu1 %2622, %v1002_v34  }
  0x3e   : > { %2412 = vmatmul.mubr.msk.f32.gmra.mrb[4].mxu0 %vm567_vm0, %v562_v20  ;;  %2416 = vmatmul.mubr.msk.f32.gmra.mrb[4].mxu1 %vm567_vm0, %v566_v21 }
  0x3f   : > { %671 = vmatprep.mubr.f32.mxu0 %v2885_v7  ;;  %894 = vmatprep.mubr.f32.mxu1 %v2885_v7 }
  0x40   : > { %1024 = vperm.xlu0 %2621, %v1003_v33   ;;  %1029 = vperm.xlu1 %2622, %v1004_v36  }
  0x42   : > { %2413 = vmatmul.mubr.msk.f32.gmra.mrb[6].mxu0 %vm567_vm0, %v563_v22 }
  0x43   : > { %1133 = vmatprep.mubr.f32.mxu0 %v2885_v7 }
  0x44   : > { %1034 = vperm.xlu0 %2621, %v1005_v35   ;;  %1039 = vperm.xlu1 %2622, %v1006_v38  }
  0x48   : > { %1248 = vperm.xlu0 %2621, %v1239_v37   ;;  %1253 = vperm.xlu1 %2622, %v1240_v40  }
  0x4c   : > { %1258 = vperm.xlu0 %2621, %v1241_v39   ;;  %1263 = vperm.xlu1 %2622, %v1242_v42  }
  0x50   : > { %1268 = vperm.xlu0 %2621, %v1243_v41   ;;  %1273 = vperm.xlu1 %2622, %v1244_v44  }
  0x54   : > { %1278 = vperm.xlu0 %2621, %v1245_v43   ;;  %1487 = vperm.xlu1 %2622, %v1478_v46  }
  0x58   : > { %1492 = vperm.xlu0 %2621, %v1479_v45   ;;  %1497 = vperm.xlu1 %2622, %v1480_v48  }
  0x5c   : > { %1502 = vperm.xlu0 %2621, %v1481_v47   ;;  %1507 = vperm.xlu1 %2622, %v1482_v50  }
  0x60   : > { %1512 = vperm.xlu0 %2621, %v1483_v49   ;;  %1517 = vperm.xlu1 %2622, %v1484_v52  }
  0x64   : > { %1726 = vperm.xlu0 %2621, %v1717_v51   ;;  %1731 = vperm.xlu1 %2622, %v1718_v54  }
  0x68   : > { %1736 = vperm.xlu0 %2621, %v1719_v53   ;;  %1741 = vperm.xlu1 %2622, %v1720_v56  }
  0x6c   : > { %1746 = vperm.xlu0 %2621, %v1721_v55   ;;  %1751 = vperm.xlu1 %2622, %v1722_v58  }
  0x70   : > { %1756 = vperm.xlu0 %2621, %v1723_v57   ;;  %1965 = vperm.xlu1 %2622, %v1956_v60  }
  0x74   : > { %1970 = vperm.xlu0 %2621, %v1957_v59   ;;  %1975 = vperm.xlu1 %2622, %v1958_v4  }
  0x78   : > { %1980 = vperm.xlu0 %2621, %v1959_v61   ;;  %1985 = vperm.xlu1 %2622, %v1960_v11  }
  0x7c   : > { %1990 = vperm.xlu0 %2621, %v1961_v5   ;;  %1995 = vperm.xlu1 %2622, %v1962_v24  }
  0x80   : > { %2192 = vperm.xlu0 %2621, %v2189_v16  }
  0xaa   : > { %v769_v24 = vpop.permute.xlu0 %768 }
 0x109   : > { %v655_v62 = vpop.f32.mrb[0].mxu0  ;;  %v679_v63 = vpop.f32.mrb[0].mxu1 }
 0x10a   : > { %v696_v0 = vmul.f32 0.5, %v655_v62  ;;  %v3196_v1 = vmul.f32 0.5, %v679_v63  ;;  %v657_v2 = vpop.f32.mrb[1].mxu0  ;;  %v681_v3 = vpop.f32.mrb[1].mxu1 }
 0x10b   : > { %v3204_v6 = vmul.f32 0.5, %v657_v2  ;;  %v3206_v8 = vmul.f32 0.5, %v681_v3 }
 0x10c   : > { %2623 = vtanh.f32 %v696_v0 }
 0x10d   : > { %2625 = vtanh.f32 %v3196_v1  ;;  %v661_v9 = vpop.f32.mrb[2].mxu0  ;;  %v685_v10 = vpop.f32.mrb[2].mxu1 }
 0x10e   : > { %2627 = vtanh.f32 %v3204_v6  ;;  %v698_v12 = vmul.f32 0.5, %v661_v9  ;;  %v706_v13 = vmul.f32 0.5, %v685_v10  ;;  %v663_v14 = vpop.f32.mrb[3].mxu0  ;;  %v687_v15 = vpop.f32.mrb[3].mxu1 }
 0x10f   : > { %2629 = vtanh.f32 %v3206_v8  ;;  %v699_v17 = vmul.f32 0.5, %v663_v14  ;;  %v707_v18 = vmul.f32 0.5, %v687_v15 }
 0x110   : > { %2631 = vtanh.f32 %v698_v12 }
 0x111   : > { %2633 = vtanh.f32 %v706_v13  ;;  %v667_v19 = vpop.f32.mrb[4].mxu0  ;;  %v691_v20 = vpop.f32.mrb[4].mxu1 }
 0x112   : > { %2635 = vtanh.f32 %v699_v17  ;;  %v700_v21 = vmul.f32 0.5, %v667_v19  ;;  %v669_v22 = vpop.f32.mrb[5].mxu0  ;;  %v693_v23 = vpop.f32.mrb[5].mxu1  ;;  %v708_v44 = vmul.f32 0.5, %v691_v20  ;;  %v754_v19 = vld [vmem:[%s3549_s2 + $0x10] sm:$0xff]  ;;  %v755_v20 = vld [vmem:[%s3549_s2 + $0x18] sm:$0xff] }
 0x113   : > { %2637 = vtanh.f32 %v707_v18  ;;  %v701_v25 = vmul.f32 0.5, %v669_v22  ;;  %v709_v35 = vmul.f32 0.5, %v693_v23  ;;  %v757_v22 = vld [vmem:[%s3549_s2 + $0x28] sm:$0xff]  ;;  %v758_v23 = vld [vmem:[%s3549_s2 + $0x30] sm:$0x3] }
 0x114   : > { %2639 = vtanh.f32 %v700_v21 }
 0x115   : > { %v673_v26 = vpop.f32.mrb[6].mxu0  ;;  %2641 = vtanh.f32 %v701_v25 }
 0x116   : > { %v2624_v27 = vpop.eup %2623  ;;  %v702_v28 = vmul.f32 0.5, %v673_v26  ;;  %v675_v29 = vpop.f32.mrb[7].mxu0 }
 0x117   : > { %v2626_v30 = vpop.eup %2625  ;;  %v703_v31 = vmul.f32 0.5, %v675_v29  ;;  %v724_v34 = vadd.f32 1.0, %v2624_v27 }
 0x118   : > { %v2628_v32 = vpop.eup %2627  ;;  %2643 = vtanh.f32 %v702_v28  ;;  %v732_v37 = vadd.f32 1.0, %v2626_v30  ;;  %v774_v30 = vpop.permute.xlu0 %773 }
 0x119   : > { %v2630_v33 = vpop.eup %2629  ;;  %2645 = vtanh.f32 %v703_v31  ;;  %v725_v39 = vadd.f32 1.0, %v2628_v32  ;;  %v738_v46 = vmul.f32 %v724_v34, %v696_v0 }
 0x11a   : > { %v2632_v36 = vpop.eup %2631  ;;  %v733_v42 = vadd.f32 1.0, %v2630_v33  ;;  %2647 = vtanh.f32 %v709_v35  ;;  %v746_v50 = vmul.f32 %v732_v37, %v3196_v1 }
 0x11b   : > { %v2634_v38 = vpop.eup %2633  ;;  %v726_v40 = vadd.f32 1.0, %v2632_v36  ;;  %v739_v53 = vmul.f32 %v725_v39, %v3204_v6  ;;  %2649 = vtanh.f32 %v708_v44 }
 0x11c   : > { %v2636_v41 = vpop.eup %2635  ;;  %v734_v43 = vadd.f32 1.0, %v2634_v38  ;;  %v747_v57 = vmul.f32 %v733_v42, %v3206_v8 }
 0x11d   : > { %v2638_v45 = vpop.eup %2637  ;;  %v740_v47 = vmul.f32 %v726_v40, %v698_v12  ;;  %v727_v48 = vadd.f32 1.0, %v2636_v41 }
 0x11e   : > { %v2640_v49 = vpop.eup %2639  ;;  %v748_v51 = vmul.f32 %v734_v43, %v706_v13  ;;  %v735_v52 = vadd.f32 1.0, %v2638_v45 }
 0x11f   : > { %v2491_v54 = vpack.c.bf16 %v740_v47, %v738_v46  ;;  %v741_v55 = vmul.f32 %v727_v48, %v699_v17  ;;  %v2642_v56 = vpop.eup %2641  ;;  %v728_v60 = vadd.f32 1.0, %v2640_v49  ;;  %v752_v17 = vld [vmem:[%s3549_s2] sm:$0xff] }
 0x120   : > { %v2499_v58 = vpack.c.bf16 %v748_v51, %v746_v50  ;;  %v749_v59 = vmul.f32 %v735_v52, %v707_v18  ;;  %v729_v63 = vadd.f32 1.0, %v2642_v56  ;;  %v753_v18 = vld [vmem:[%s3549_s2 + $0x8] sm:$0xff] }
 0x121   : > { %v2489_v61 = vpack.c.bf16 %v741_v55, %v739_v53  ;;  %v742_v4 = vmul.f32 %v728_v60, %v700_v21  ;;  %v756_v21 = vld [vmem:[%s3549_s2 + $0x20] sm:$0xff]  ;;  %v789_v53 = vpop.permute.xlu0 %788 }
 0x122   : > { %v2644_v62 = vpop.eup %2643  ;;  %v2497_v0 = vpack.c.bf16 %v749_v59, %v747_v57  ;;  %v743_v6 = vmul.f32 %v729_v63, %v701_v25 }
 0x123   : > { %v2646_v2 = vpop.eup %2645  ;;  %v730_v3 = vadd.f32 1.0, %v2644_v62  ;;  %2490 = vmatprep.subr.bf16.mxu1 %v2489_v61 }
 0x124   : > { %v731_v1 = vadd.f32 1.0, %v2646_v2  ;;  %2492 = vmatpush1.bf16.msra.mxu1 %v2491_v54  ;;  %v2648_v10 = vpop.eup %2647 }
 0x125   : > { %v744_v5 = vmul.f32 %v730_v3, %v702_v28  ;;  %v2650_v12 = vpop.eup %2649  ;;  %v737_v13 = vadd.f32 1.0, %v2648_v10 }
 0x126   : > { %v745_v9 = vmul.f32 %v731_v1, %v703_v31  ;;  %v736_v14 = vadd.f32 1.0, %v2650_v12 }
 0x127   : > { %v2495_v11 = vpack.c.bf16 %v744_v5, %v742_v4  ;;  %v751_v15 = vmul.f32 %v737_v13, %v709_v35  ;;  %v779_v35 = vpop.permute.xlu1 %778 }
 0x128   : > { %v2493_v8 = vpack.c.bf16 %v745_v9, %v743_v6  ;;  %v750_v16 = vmul.f32 %v736_v14, %v708_v44 }
 0x12a   : > { %2494 = vmatprep.subr.bf16.mxu1 %v2493_v8 }
 0x12b   : > { %2496 = vmatpush1.bf16.msra.mxu1 %v2495_v11  ;;  %v784_v44 = vpop.permute.xlu1 %783 }
 0x12c   : > { %2498 = vmatprep.subr.bf16.mxu1 %v2497_v0 }
 0x12f   : > { %2500 = vmatpush1.bf16.msra.mxu1 %v2499_v58  ;;  %v794_v0 = vpop.permute.xlu1 %793 }
 0x130   : > { %2417 = vmatprep.subr.msk.mxu1 %vm823_vm1, %v751_v15 }
 0x133   : > { %2418 = vmatpush1.msk.msra.mxu1 %vm823_vm1, %v750_v16  ;;  %v799_v16 = vpop.permute.xlu0 %798 }
 0x134   : > { %2419 = vmatmul.mubr.msk.f32.vlgmr.msra.gmra.mrb[6].mxu1 %vm801_vm2, %v752_v17 }
 0x135   : > { %900 = vmatprep.mubr.f32.mxu1 %v2885_v7 }
 0x138   : > { %2420 = vmatmul.mubr.msk.f32.gmra.mrb[8].mxu1 %vm801_vm2, %v753_v18 }
 0x139   : > { %906 = vmatprep.mubr.f32.mxu1 %v2885_v7 }
 0x13c   : > { %2421 = vmatmul.mubr.msk.f32.gmra.mrb[10].mxu1 %vm801_vm2, %v754_v19 }
 0x13d   : > { %912 = vmatprep.mubr.f32.mxu1 %v2885_v7 }
 0x140   : > { %2422 = vmatmul.mubr.msk.f32.gmra.mrb[12].mxu1 %vm801_vm2, %v755_v20 }
 0x141   : > { %918 = vmatprep.mubr.f32.mxu1 %v2885_v7 }
 0x144   : > { %2423 = vmatmul.mubr.msk.f32.gmra.mrb[14].mxu1 %vm801_vm2, %v756_v21 }
 0x145   : > { %924 = vmatprep.mubr.f32.mxu1 %v2885_v7 }
 0x148   : > { %2424 = vmatmul.mubr.msk.f32.gmra.mrb[16].mxu1 %vm801_vm2, %v757_v22 }
 0x149   : > { %930 = vmatprep.mubr.f32.mxu1 %v2885_v7 }
 0x14c   : > { %2425 = vmatmul.mubr.msk.f32.gmra.mrb[18].mxu1 %vm801_vm2, %v758_v23 }
 0x14d   : > { %1372 = vmatprep.mubr.f32.mxu1 %v2885_v7 }
 0x207   : > { %v896_v25 = vpop.f32.mrb[6].mxu1 }
 0x208   : > { %v897_v26 = vadd.f32 %v896_v25, %v769_v24  ;;  %v898_v27 = vpop.f32.mrb[7].mxu1 }
 0x209   : > { %v899_v28 = vadd.f32 %v898_v27, %v769_v24 }
 0x20a   : > { %v937_v29 = vmul.f32 0.5, %v897_v26 }
 0x20b   : > { %v938_v31 = vmul.f32 0.5, %v899_v28  ;;  %v902_v32 = vpop.f32.mrb[8].mxu1 }
 0x20c   : > { %2651 = vtanh.f32 %v937_v29  ;;  %v903_v33 = vadd.f32 %v902_v32, %v774_v30  ;;  %v904_v34 = vpop.f32.mrb[9].mxu1 }
 0x20d   : > { %2653 = vtanh.f32 %v938_v31  ;;  %v905_v36 = vadd.f32 %v904_v34, %v774_v30 }
 0x20e   : > { %v939_v37 = vmul.f32 0.5, %v903_v33 }
 0x20f   : > { %v940_v38 = vmul.f32 0.5, %v905_v36  ;;  %v908_v39 = vpop.f32.mrb[10].mxu1 }
 0x210   : > { %2655 = vtanh.f32 %v939_v37  ;;  %v909_v40 = vadd.f32 %v908_v39, %v779_v35  ;;  %v910_v41 = vpop.f32.mrb[11].mxu1 }
 0x211   : > { %2657 = vtanh.f32 %v940_v38  ;;  %v911_v42 = vadd.f32 %v910_v41, %v779_v35 }
 0x212   : > { %v3257_v43 = vmul.f32 0.5, %v909_v40 }
 0x213   : > { %v3259_v45 = vmul.f32 0.5, %v911_v42  ;;  %v914_v46 = vpop.f32.mrb[12].mxu1 }
 0x214   : > { %2659 = vtanh.f32 %v3257_v43  ;;  %v915_v47 = vadd.f32 %v914_v46, %v784_v44  ;;  %v916_v48 = vpop.f32.mrb[13].mxu1 }
 0x215   : > { %2661 = vtanh.f32 %v3259_v45  ;;  %v917_v49 = vadd.f32 %v916_v48, %v784_v44 }
 0x216   : > { %v2652_v50 = vpop.eup %2651  ;;  %v943_v51 = vmul.f32 0.5, %v915_v47 }
 0x217   : > { %v2654_v52 = vpop.eup %2653  ;;  %v944_v54 = vmul.f32 0.5, %v917_v49  ;;  %v920_v55 = vpop.f32.mrb[14].mxu1  ;;  %v965_v58 = vadd.f32 1.0, %v2652_v50 }
 0x218   : > { %2663 = vtanh.f32 %v943_v51  ;;  %v921_v56 = vadd.f32 %v920_v55, %v789_v53  ;;  %v922_v57 = vpop.f32.mrb[15].mxu1  ;;  %v966_v61 = vadd.f32 1.0, %v2654_v52 }
 0x219   : > { %2665 = vtanh.f32 %v944_v54  ;;  %v923_v59 = vadd.f32 %v922_v57, %v789_v53  ;;  %v979_v9 = vmul.f32 %v965_v58, %v937_v29  ;;  %v993_v58 = vld [vmem:[%s3551_s4] sm:$0xff] }
 0x21a   : > { %v2656_v60 = vpop.eup %2655  ;;  %v945_v62 = vmul.f32 0.5, %v921_v56  ;;  %v980_v12 = vmul.f32 %v966_v61, %v938_v31  ;;  %v996_v61 = vld [vmem:[%s3551_s4 + $0x18] sm:$0xff] }
 0x21b   : > { %v2658_v63 = vpop.eup %2657  ;;  %v967_v2 = vadd.f32 1.0, %v2656_v60  ;;  %v946_v3 = vmul.f32 0.5, %v923_v59  ;;  %v926_v1 = vpop.f32.mrb[16].mxu1  ;;  %v994_v59 = vld [vmem:[%s3551_s4 + $0x8] sm:$0xff]  ;;  %v995_v60 = vld [vmem:[%s3551_s4 + $0x10] sm:$0xff] }
 0x21c   : > { %v968_v4 = vadd.f32 1.0, %v2658_v63  ;;  %2667 = vtanh.f32 %v945_v62  ;;  %v927_v5 = vadd.f32 %v926_v1, %v794_v0  ;;  %v928_v6 = vpop.f32.mrb[17].mxu1  ;;  %v998_v63 = vld [vmem:[%s3551_s4 + $0x28] sm:$0xff] }
 0x21d   : > { %v981_v10 = vmul.f32 %v967_v2, %v939_v37  ;;  %2669 = vtanh.f32 %v946_v3  ;;  %v929_v11 = vadd.f32 %v928_v6, %v794_v0  ;;  %v999_v0 = vld [vmem:[%s3551_s4 + $0x30] sm:$0x3]  ;;  %v1010_v2 = vpop.permute.xlu1 %1009 }
 0x21e   : > { %v2660_v8 = vpop.eup %2659  ;;  %v982_v13 = vmul.f32 %v968_v4, %v940_v38  ;;  %v947_v14 = vmul.f32 0.5, %v927_v5 }
 0x21f   : > { %v2662_v15 = vpop.eup %2661  ;;  %v2503_v17 = vpack.c.bf16 %v981_v10, %v979_v9  ;;  %v948_v18 = vmul.f32 0.5, %v929_v11  ;;  %v932_v19 = vpop.f32.mrb[18].mxu1  ;;  %v969_v23 = vadd.f32 1.0, %v2660_v8 }
 0x220   : > { %2671 = vtanh.f32 %v947_v14  ;;  %v933_v20 = vadd.f32 %v932_v19, %v799_v16  ;;  %v934_v21 = vpop.f32.mrb[19].mxu1  ;;  %v2501_v22 = vpack.c.bf16 %v982_v13, %v980_v12  ;;  %v970_v26 = vadd.f32 1.0, %v2662_v15  ;;  %v1015_v9 = vpop.permute.xlu0 %1014 }
 0x221   : > { %2673 = vtanh.f32 %v948_v18  ;;  %v935_v24 = vadd.f32 %v934_v21, %v799_v16  ;;  %v983_v32 = vmul.f32 %v969_v23, %v3257_v43  ;;  %v1020_v15 = vpop.permute.xlu1 %1019 }
 0x222   : > { %v2664_v25 = vpop.eup %2663  ;;  %v949_v27 = vmul.f32 0.5, %v933_v20  ;;  %2502 = vmatprep.subr.bf16.mxu0 %v2501_v22  ;;  %v984_v35 = vmul.f32 %v970_v26, %v3259_v45 }
 0x223   : > { %v2666_v28 = vpop.eup %2665  ;;  %v971_v29 = vadd.f32 1.0, %v2664_v25  ;;  %v950_v30 = vmul.f32 0.5, %v935_v24  ;;  %2504 = vmatpush1.bf16.msra.mxu0 %v2503_v17 }
 0x224   : > { %v972_v31 = vadd.f32 1.0, %v2666_v28  ;;  %2675 = vtanh.f32 %v949_v27  ;;  %v1025_v22 = vpop.permute.xlu0 %1024 }
 0x225   : > { %v985_v33 = vmul.f32 %v971_v29, %v943_v51  ;;  %2677 = vtanh.f32 %v950_v30 }
 0x226   : > { %v2668_v34 = vpop.eup %2667  ;;  %v986_v36 = vmul.f32 %v972_v31, %v944_v54  ;;  %v1030_v31 = vpop.permute.xlu1 %1029 }
 0x227   : > { %v2670_v37 = vpop.eup %2669  ;;  %v2507_v38 = vpack.c.bf16 %v985_v33, %v983_v32  ;;  %v973_v40 = vadd.f32 1.0, %v2668_v34 }
 0x228   : > { %v2505_v39 = vpack.c.bf16 %v986_v36, %v984_v35  ;;  %v974_v42 = vadd.f32 1.0, %v2670_v37 }
 0x229   : > { %v987_v48 = vmul.f32 %v973_v40, %v945_v62  ;;  %v997_v62 = vld [vmem:[%s3551_s4 + $0x20] sm:$0xff] }
 0x22a   : > { %v2672_v41 = vpop.eup %2671  ;;  %2506 = vmatprep.subr.bf16.mxu0 %v2505_v39  ;;  %v988_v50 = vmul.f32 %v974_v42, %v946_v3  ;;  %v1035_v42 = vpop.permute.xlu0 %1034 }
 0x22b   : > { %v2674_v44 = vpop.eup %2673  ;;  %v975_v46 = vadd.f32 1.0, %v2672_v41  ;;  %2508 = vmatpush1.bf16.msra.mxu0 %v2507_v38 }
 0x22c   : > { %v976_v47 = vadd.f32 1.0, %v2674_v44 }
 0x22d   : > { %v989_v49 = vmul.f32 %v975_v46, %v947_v14 }
 0x22e   : > { %v2676_v43 = vpop.eup %2675  ;;  %v990_v51 = vmul.f32 %v976_v47, %v948_v18 }
 0x22f   : > { %v2678_v52 = vpop.eup %2677  ;;  %v2511_v53 = vpack.c.bf16 %v989_v49, %v987_v48  ;;  %v977_v55 = vadd.f32 1.0, %v2676_v43 }
 0x230   : > { %v978_v45 = vadd.f32 1.0, %v2678_v52  ;;  %v2509_v54 = vpack.c.bf16 %v990_v51, %v988_v50 }
 0x231   : > { %v991_v57 = vmul.f32 %v977_v55, %v949_v27 }
 0x232   : > { %v992_v56 = vmul.f32 %v978_v45, %v950_v30  ;;  %2510 = vmatprep.subr.bf16.mxu0 %v2509_v54 }
 0x233   : > { %2512 = vmatpush1.bf16.msra.mxu0 %v2511_v53 }
 0x234   : > { %2426 = vmatprep.subr.msk.mxu0 %vm823_vm1, %v992_v56 }
 0x237   : > { %2427 = vmatpush1.msk.msra.mxu0 %vm823_vm1, %v991_v57  ;;  %v1040_v57 = vpop.permute.xlu1 %1039 }
 0x238   : > { %2428 = vmatmul.mubr.msk.f32.vlgmr.msra.gmra.mrb[8].mxu0 %vm801_vm2, %v993_v58 }
 0x239   : > { %1139 = vmatprep.mubr.f32.mxu0 %v2885_v7 }
 0x23c   : > { %2429 = vmatmul.mubr.msk.f32.gmra.mrb[10].mxu0 %vm801_vm2, %v994_v59 }
 0x23d   : > { %1145 = vmatprep.mubr.f32.mxu0 %v2885_v7 }
 0x240   : > { %2430 = vmatmul.mubr.msk.f32.gmra.mrb[12].mxu0 %vm801_vm2, %v995_v60 }
 0x241   : > { %1151 = vmatprep.mubr.f32.mxu0 %v2885_v7 }
 0x244   : > { %2431 = vmatmul.mubr.msk.f32.gmra.mrb[14].mxu0 %vm801_vm2, %v996_v61 }
 0x245   : > { %1157 = vmatprep.mubr.f32.mxu0 %v2885_v7 }
 0x248   : > { %2432 = vmatmul.mubr.msk.f32.gmra.mrb[16].mxu0 %vm801_vm2, %v997_v62 }
 0x249   : > { %1163 = vmatprep.mubr.f32.mxu0 %v2885_v7 }
 0x24c   : > { %2433 = vmatmul.mubr.msk.f32.gmra.mrb[18].mxu0 %vm801_vm2, %v998_v63 }
 0x24d   : > { %1169 = vmatprep.mubr.f32.mxu0 %v2885_v7 }
 0x250   : > { %2434 = vmatmul.mubr.msk.f32.gmra.mrb[20].mxu0 %vm801_vm2, %v999_v0 }
 0x251   : > { %1611 = vmatprep.mubr.f32.mxu0 %v2885_v7 }
 0x30b   : > { %v1135_v3 = vpop.f32.mrb[8].mxu0 }
 0x30c   : > { %v1136_v1 = vadd.f32 %v1135_v3, %v1010_v2  ;;  %v1137_v4 = vpop.f32.mrb[9].mxu0 }
 0x30d   : > { %v1138_v5 = vadd.f32 %v1137_v4, %v1010_v2 }
 0x30e   : > { %v1176_v6 = vmul.f32 0.5, %v1136_v1 }
 0x30f   : > { %v1177_v10 = vmul.f32 0.5, %v1138_v5  ;;  %v1141_v11 = vpop.f32.mrb[10].mxu0 }
 0x310   : > { %2679 = vtanh.f32 %v1176_v6  ;;  %v1142_v8 = vadd.f32 %v1141_v11, %v1015_v9  ;;  %v1143_v12 = vpop.f32.mrb[11].mxu0 }
 0x311   : > { %2681 = vtanh.f32 %v1177_v10  ;;  %v1144_v13 = vadd.f32 %v1143_v12, %v1015_v9 }
 0x312   : > { %v1178_v14 = vmul.f32 0.5, %v1142_v8 }
 0x313   : > { %v1179_v16 = vmul.f32 0.5, %v1144_v13  ;;  %v1147_v17 = vpop.f32.mrb[12].mxu0 }
 0x314   : > { %2683 = vtanh.f32 %v1178_v14  ;;  %v1148_v18 = vadd.f32 %v1147_v17, %v1020_v15  ;;  %v1149_v19 = vpop.f32.mrb[13].mxu0 }
 0x315   : > { %2685 = vtanh.f32 %v1179_v16  ;;  %v1150_v20 = vadd.f32 %v1149_v19, %v1020_v15 }
 0x316   : > { %v3302_v21 = vmul.f32 0.5, %v1148_v18 }
 0x317   : > { %v3304_v23 = vmul.f32 0.5, %v1150_v20  ;;  %v1153_v24 = vpop.f32.mrb[14].mxu0 }
 0x318   : > { %2687 = vtanh.f32 %v3302_v21  ;;  %v1154_v25 = vadd.f32 %v1153_v24, %v1025_v22  ;;  %v1155_v26 = vpop.f32.mrb[15].mxu0 }
 0x319   : > { %2689 = vtanh.f32 %v3304_v23  ;;  %v1156_v27 = vadd.f32 %v1155_v26, %v1025_v22 }
 0x31a   : > { %v2680_v28 = vpop.eup %2679  ;;  %v1182_v29 = vmul.f32 0.5, %v1154_v25 }
 0x31b   : > { %v2682_v30 = vpop.eup %2681  ;;  %v1183_v32 = vmul.f32 0.5, %v1156_v27  ;;  %v1159_v33 = vpop.f32.mrb[16].mxu0  ;;  %v1204_v36 = vadd.f32 1.0, %v2680_v28 }
 0x31c   : > { %2691 = vtanh.f32 %v1182_v29  ;;  %v1160_v34 = vadd.f32 %v1159_v33, %v1030_v31  ;;  %v1161_v35 = vpop.f32.mrb[17].mxu0  ;;  %v1205_v39 = vadd.f32 1.0, %v2682_v30 }
 0x31d   : > { %2693 = vtanh.f32 %v1183_v32  ;;  %v1162_v37 = vadd.f32 %v1161_v35, %v1030_v31  ;;  %v1218_v50 = vmul.f32 %v1204_v36, %v1176_v6  ;;  %v1232_v36 = vld [vmem:[%s3553_s6] sm:$0xff] }
 0x31e   : > { %v2684_v38 = vpop.eup %2683  ;;  %v1184_v40 = vmul.f32 0.5, %v1160_v34  ;;  %v1219_v45 = vmul.f32 %v1205_v39, %v1177_v10  ;;  %v1235_v39 = vld [vmem:[%s3553_s6 + $0x18] sm:$0xff] }
 0x31f   : > { %v2686_v41 = vpop.eup %2685  ;;  %v1206_v44 = vadd.f32 1.0, %v2684_v38  ;;  %v1185_v46 = vmul.f32 0.5, %v1162_v37  ;;  %v1165_v47 = vpop.f32.mrb[18].mxu0  ;;  %v1233_v37 = vld [vmem:[%s3553_s6 + $0x8] sm:$0xff]  ;;  %v1234_v38 = vld [vmem:[%s3553_s6 + $0x10] sm:$0xff] }
 0x320   : > { %v1207_v48 = vadd.f32 1.0, %v2686_v41  ;;  %2695 = vtanh.f32 %v1184_v40  ;;  %v1166_v49 = vadd.f32 %v1165_v47, %v1035_v42  ;;  %v1167_v43 = vpop.f32.mrb[19].mxu0  ;;  %v1237_v41 = vld [vmem:[%s3553_s6 + $0x28] sm:$0xff] }
 0x321   : > { %v1220_v51 = vmul.f32 %v1206_v44, %v1178_v14  ;;  %2697 = vtanh.f32 %v1185_v46  ;;  %v1168_v52 = vadd.f32 %v1167_v43, %v1035_v42  ;;  %v1238_v42 = vld [vmem:[%s3553_s6 + $0x30] sm:$0x3]  ;;  %v1249_v44 = vpop.permute.xlu0 %1248 }
 0x322   : > { %v2688_v53 = vpop.eup %2687  ;;  %v1221_v54 = vmul.f32 %v1207_v48, %v1179_v16  ;;  %v1186_v55 = vmul.f32 0.5, %v1166_v49 }
 0x323   : > { %v2690_v56 = vpop.eup %2689  ;;  %v2515_v58 = vpack.c.bf16 %v1220_v51, %v1218_v50  ;;  %v1187_v59 = vmul.f32 0.5, %v1168_v52  ;;  %v1171_v60 = vpop.f32.mrb[20].mxu0  ;;  %v1208_v0 = vadd.f32 1.0, %v2688_v53 }
 0x324   : > { %2699 = vtanh.f32 %v1186_v55  ;;  %v1172_v61 = vadd.f32 %v1171_v60, %v1040_v57  ;;  %v1173_v62 = vpop.f32.mrb[21].mxu0  ;;  %v2513_v63 = vpack.c.bf16 %v1221_v54, %v1219_v45  ;;  %v1209_v1 = vadd.f32 1.0, %v2690_v56  ;;  %v1254_v50 = vpop.permute.xlu1 %1253 }
 0x325   : > { %2701 = vtanh.f32 %v1187_v59  ;;  %v1174_v2 = vadd.f32 %v1173_v62, %v1040_v57  ;;  %v1222_v11 = vmul.f32 %v1208_v0, %v3302_v21  ;;  %v1259_v56 = vpop.permute.xlu0 %1258 }
 0x326   : > { %v2692_v3 = vpop.eup %2691  ;;  %v1188_v4 = vmul.f32 0.5, %v1172_v61  ;;  %2514 = vmatprep.subr.bf16.mxu1 %v2513_v63  ;;  %v1223_v13 = vmul.f32 %v1209_v1, %v3304_v23 }
 0x327   : > { %v2694_v5 = vpop.eup %2693  ;;  %v1210_v6 = vadd.f32 1.0, %v2692_v3  ;;  %v1189_v9 = vmul.f32 0.5, %v1174_v2  ;;  %2516 = vmatpush1.bf16.msra.mxu1 %v2515_v58 }
 0x328   : > { %v1211_v10 = vadd.f32 1.0, %v2694_v5  ;;  %2703 = vtanh.f32 %v1188_v4  ;;  %v1264_v63 = vpop.permute.xlu1 %1263 }
 0x329   : > { %v1224_v8 = vmul.f32 %v1210_v6, %v1182_v29  ;;  %2705 = vtanh.f32 %v1189_v9 }
 0x32a   : > { %v2696_v12 = vpop.eup %2695  ;;  %v1225_v14 = vmul.f32 %v1211_v10, %v1183_v32  ;;  %v1269_v10 = vpop.permute.xlu0 %1268 }
 0x32b   : > { %v2698_v15 = vpop.eup %2697  ;;  %v2519_v16 = vpack.c.bf16 %v1224_v8, %v1222_v11  ;;  %v1212_v18 = vadd.f32 1.0, %v2696_v12 }
 0x32c   : > { %v2517_v17 = vpack.c.bf16 %v1225_v14, %v1223_v13  ;;  %v1213_v20 = vadd.f32 1.0, %v2698_v15 }
 0x32d   : > { %v1226_v26 = vmul.f32 %v1212_v18, %v1184_v40  ;;  %v1236_v40 = vld [vmem:[%s3553_s6 + $0x20] sm:$0xff] }
 0x32e   : > { %v2700_v19 = vpop.eup %2699  ;;  %2518 = vmatprep.subr.bf16.mxu1 %v2517_v17  ;;  %v1227_v28 = vmul.f32 %v1213_v20, %v1185_v46  ;;  %v1274_v20 = vpop.permute.xlu1 %1273 }
 0x32f   : > { %v2702_v22 = vpop.eup %2701  ;;  %v1214_v24 = vadd.f32 1.0, %v2700_v19  ;;  %2520 = vmatpush1.bf16.msra.mxu1 %v2519_v16 }
 0x330   : > { %v1215_v25 = vadd.f32 1.0, %v2702_v22 }
 0x331   : > { %v1228_v27 = vmul.f32 %v1214_v24, %v1186_v55 }
 0x332   : > { %v2704_v21 = vpop.eup %2703  ;;  %v1229_v29 = vmul.f32 %v1215_v25, %v1187_v59 }
 0x333   : > { %v2706_v30 = vpop.eup %2705  ;;  %v2523_v31 = vpack.c.bf16 %v1228_v27, %v1226_v26  ;;  %v1216_v33 = vadd.f32 1.0, %v2704_v21 }
 0x334   : > { %v1217_v23 = vadd.f32 1.0, %v2706_v30  ;;  %v2521_v32 = vpack.c.bf16 %v1229_v29, %v1227_v28 }
 0x335   : > { %v1230_v35 = vmul.f32 %v1216_v33, %v1188_v4 }
 0x336   : > { %v1231_v34 = vmul.f32 %v1217_v23, %v1189_v9  ;;  %2522 = vmatprep.subr.bf16.mxu1 %v2521_v32 }
 0x337   : > { %2524 = vmatpush1.bf16.msra.mxu1 %v2523_v31 }
 0x338   : > { %2435 = vmatprep.subr.msk.mxu1 %vm823_vm1, %v1231_v34 }
 0x33b   : > { %2436 = vmatpush1.msk.msra.mxu1 %vm823_vm1, %v1230_v35  ;;  %v1279_v35 = vpop.permute.xlu0 %1278 }
 0x33c   : > { %2437 = vmatmul.mubr.msk.f32.vlgmr.msra.gmra.mrb[20].mxu1 %vm801_vm2, %v1232_v36 }
 0x33d   : > { %1378 = vmatprep.mubr.f32.mxu1 %v2885_v7 }
 0x340   : > { %2438 = vmatmul.mubr.msk.f32.gmra.mrb[22].mxu1 %vm801_vm2, %v1233_v37 }
 0x341   : > { %1384 = vmatprep.mubr.f32.mxu1 %v2885_v7 }
 0x344   : > { %2439 = vmatmul.mubr.msk.f32.gmra.mrb[24].mxu1 %vm801_vm2, %v1234_v38 }
 0x345   : > { %1390 = vmatprep.mubr.f32.mxu1 %v2885_v7 }
 0x348   : > { %2440 = vmatmul.mubr.msk.f32.gmra.mrb[26].mxu1 %vm801_vm2, %v1235_v39 }
 0x349   : > { %1396 = vmatprep.mubr.f32.mxu1 %v2885_v7 }
 0x34c   : > { %2441 = vmatmul.mubr.msk.f32.gmra.mrb[28].mxu1 %vm801_vm2, %v1236_v40 }
 0x34d   : > { %1402 = vmatprep.mubr.f32.mxu1 %v2885_v7 }
 0x350   : > { %2442 = vmatmul.mubr.msk.f32.gmra.mrb[30].mxu1 %vm801_vm2, %v1237_v41 }
 0x351   : > { %1408 = vmatprep.mubr.f32.mxu1 %v2885_v7 }
 0x354   : > { %2443 = vmatmul.mubr.msk.f32.gmra.mrb[32].mxu1 %vm801_vm2, %v1238_v42 }
 0x355   : > { %1850 = vmatprep.mubr.f32.mxu1 %v2885_v7 }
 0x40f   : > { %v1374_v46 = vpop.f32.mrb[20].mxu1 }
 0x410   : > { %v1375_v47 = vadd.f32 %v1374_v46, %v1249_v44  ;;  %v1376_v48 = vpop.f32.mrb[21].mxu1 }
 0x411   : > { %v1377_v49 = vadd.f32 %v1376_v48, %v1249_v44 }
 0x412   : > { %v1415_v43 = vmul.f32 0.5, %v1375_v47 }
 0x413   : > { %v1416_v51 = vmul.f32 0.5, %v1377_v49  ;;  %v1380_v52 = vpop.f32.mrb[22].mxu1 }
 0x414   : > { %2707 = vtanh.f32 %v1415_v43  ;;  %v1381_v53 = vadd.f32 %v1380_v52, %v1254_v50  ;;  %v1382_v45 = vpop.f32.mrb[23].mxu1 }
 0x415   : > { %2709 = vtanh.f32 %v1416_v51  ;;  %v1383_v54 = vadd.f32 %v1382_v45, %v1254_v50 }
 0x416   : > { %v1417_v55 = vmul.f32 0.5, %v1381_v53 }
 0x417   : > { %v1418_v57 = vmul.f32 0.5, %v1383_v54  ;;  %v1386_v58 = vpop.f32.mrb[24].mxu1 }
 0x418   : > { %2711 = vtanh.f32 %v1417_v55  ;;  %v1387_v59 = vadd.f32 %v1386_v58, %v1259_v56  ;;  %v1388_v60 = vpop.f32.mrb[25].mxu1 }
 0x419   : > { %2713 = vtanh.f32 %v1418_v57  ;;  %v1389_v61 = vadd.f32 %v1388_v60, %v1259_v56 }
 0x41a   : > { %v3347_v62 = vmul.f32 0.5, %v1387_v59 }
 0x41b   : > { %v3349_v0 = vmul.f32 0.5, %v1389_v61  ;;  %v1392_v2 = vpop.f32.mrb[26].mxu1 }
 0x41c   : > { %2715 = vtanh.f32 %v3347_v62  ;;  %v1393_v3 = vadd.f32 %v1392_v2, %v1264_v63  ;;  %v1394_v1 = vpop.f32.mrb[27].mxu1 }
 0x41d   : > { %2717 = vtanh.f32 %v3349_v0  ;;  %v1395_v4 = vadd.f32 %v1394_v1, %v1264_v63 }
 0x41e   : > { %v2708_v5 = vpop.eup %2707  ;;  %v1421_v6 = vmul.f32 0.5, %v1393_v3 }
 0x41f   : > { %v2710_v9 = vpop.eup %2709  ;;  %v1422_v11 = vmul.f32 0.5, %v1395_v4  ;;  %v1398_v8 = vpop.f32.mrb[28].mxu1  ;;  %v1443_v14 = vadd.f32 1.0, %v2708_v5 }
 0x420   : > { %2719 = vtanh.f32 %v1421_v6  ;;  %v1399_v12 = vadd.f32 %v1398_v8, %v1269_v10  ;;  %v1400_v13 = vpop.f32.mrb[29].mxu1  ;;  %v1444_v17 = vadd.f32 1.0, %v2710_v9 }
 0x421   : > { %2721 = vtanh.f32 %v1422_v11  ;;  %v1401_v15 = vadd.f32 %v1400_v13, %v1269_v10  ;;  %v1457_v28 = vmul.f32 %v1443_v14, %v1415_v43  ;;  %v1471_v14 = vld [vmem:[%s3555_s8] sm:$0xff] }
 0x422   : > { %v2712_v16 = vpop.eup %2711  ;;  %v1423_v18 = vmul.f32 0.5, %v1399_v12  ;;  %v1458_v23 = vmul.f32 %v1444_v17, %v1416_v51  ;;  %v1474_v17 = vld [vmem:[%s3555_s8 + $0x18] sm:$0xff] }
 0x423   : > { %v2714_v19 = vpop.eup %2713  ;;  %v1445_v22 = vadd.f32 1.0, %v2712_v16  ;;  %v1424_v24 = vmul.f32 0.5, %v1401_v15  ;;  %v1404_v25 = vpop.f32.mrb[30].mxu1  ;;  %v1472_v15 = vld [vmem:[%s3555_s8 + $0x8] sm:$0xff]  ;;  %v1473_v16 = vld [vmem:[%s3555_s8 + $0x10] sm:$0xff] }
 0x424   : > { %v1446_v26 = vadd.f32 1.0, %v2714_v19  ;;  %2723 = vtanh.f32 %v1423_v18  ;;  %v1405_v27 = vadd.f32 %v1404_v25, %v1274_v20  ;;  %v1406_v21 = vpop.f32.mrb[31].mxu1  ;;  %v1476_v19 = vld [vmem:[%s3555_s8 + $0x28] sm:$0xff] }
 0x425   : > { %v1459_v29 = vmul.f32 %v1445_v22, %v1417_v55  ;;  %2725 = vtanh.f32 %v1424_v24  ;;  %v1407_v30 = vadd.f32 %v1406_v21, %v1274_v20  ;;  %v1477_v20 = vld [vmem:[%s3555_s8 + $0x30] sm:$0x3]  ;;  %v1488_v22 = vpop.permute.xlu1 %1487 }
 0x426   : > { %v2716_v31 = vpop.eup %2715  ;;  %v1460_v32 = vmul.f32 %v1446_v26, %v1418_v57  ;;  %v1425_v33 = vmul.f32 0.5, %v1405_v27 }
 0x427   : > { %v2718_v34 = vpop.eup %2717  ;;  %v2527_v36 = vpack.c.bf16 %v1459_v29, %v1457_v28  ;;  %v1426_v37 = vmul.f32 0.5, %v1407_v30  ;;  %v1410_v38 = vpop.f32.mrb[32].mxu1  ;;  %v1447_v42 = vadd.f32 1.0, %v2716_v31 }
 0x428   : > { %2727 = vtanh.f32 %v1425_v33  ;;  %v1411_v39 = vadd.f32 %v1410_v38, %v1279_v35  ;;  %v1412_v40 = vpop.f32.mrb[33].mxu1  ;;  %v2525_v41 = vpack.c.bf16 %v1460_v32, %v1458_v23  ;;  %v1448_v47 = vadd.f32 1.0, %v2718_v34  ;;  %v1493_v28 = vpop.permute.xlu0 %1492 }
 0x429   : > { %2729 = vtanh.f32 %v1426_v37  ;;  %v1413_v44 = vadd.f32 %v1412_v40, %v1279_v35  ;;  %v1461_v52 = vmul.f32 %v1447_v42, %v3347_v62  ;;  %v1498_v34 = vpop.permute.xlu1 %1497 }
 0x42a   : > { %v2720_v46 = vpop.eup %2719  ;;  %v1427_v48 = vmul.f32 0.5, %v1411_v39  ;;  %2526 = vmatprep.subr.bf16.mxu0 %v2525_v41  ;;  %v1462_v54 = vmul.f32 %v1448_v47, %v3349_v0 }
 0x42b   : > { %v2722_v49 = vpop.eup %2721  ;;  %v1449_v43 = vadd.f32 1.0, %v2720_v46  ;;  %v1428_v50 = vmul.f32 0.5, %v1413_v44  ;;  %2528 = vmatpush1.bf16.msra.mxu0 %v2527_v36 }
 0x42c   : > { %v1450_v51 = vadd.f32 1.0, %v2722_v49  ;;  %2731 = vtanh.f32 %v1427_v48  ;;  %v1503_v41 = vpop.permute.xlu0 %1502 }
 0x42d   : > { %v1463_v53 = vmul.f32 %v1449_v43, %v1421_v6  ;;  %2733 = vtanh.f32 %v1428_v50 }
 0x42e   : > { %v2724_v45 = vpop.eup %2723  ;;  %v1464_v55 = vmul.f32 %v1450_v51, %v1422_v11  ;;  %v1508_v51 = vpop.permute.xlu1 %1507 }
 0x42f   : > { %v2726_v56 = vpop.eup %2725  ;;  %v2531_v57 = vpack.c.bf16 %v1463_v53, %v1461_v52  ;;  %v1451_v59 = vadd.f32 1.0, %v2724_v45 }
 0x430   : > { %v2529_v58 = vpack.c.bf16 %v1464_v55, %v1462_v54  ;;  %v1452_v61 = vadd.f32 1.0, %v2726_v56 }
 0x431   : > { %v1465_v1 = vmul.f32 %v1451_v59, %v1423_v18  ;;  %v1475_v18 = vld [vmem:[%s3555_s8 + $0x20] sm:$0xff] }
 0x432   : > { %v2728_v60 = vpop.eup %2727  ;;  %2530 = vmatprep.subr.bf16.mxu0 %v2529_v58  ;;  %v1466_v5 = vmul.f32 %v1452_v61, %v1424_v24  ;;  %v1513_v61 = vpop.permute.xlu0 %1512 }
 0x433   : > { %v2730_v63 = vpop.eup %2729  ;;  %v1453_v2 = vadd.f32 1.0, %v2728_v60  ;;  %2532 = vmatpush1.bf16.msra.mxu0 %v2531_v57 }
 0x434   : > { %v1454_v3 = vadd.f32 1.0, %v2730_v63 }
 0x435   : > { %v1467_v4 = vmul.f32 %v1453_v2, %v1425_v33 }
 0x436   : > { %v2732_v62 = vpop.eup %2731  ;;  %v1468_v6 = vmul.f32 %v1454_v3, %v1426_v37 }
 0x437   : > { %v2734_v9 = vpop.eup %2733  ;;  %v2535_v10 = vpack.c.bf16 %v1467_v4, %v1465_v1  ;;  %v1455_v8 = vadd.f32 1.0, %v2732_v62 }
 0x438   : > { %v1456_v0 = vadd.f32 1.0, %v2734_v9  ;;  %v2533_v11 = vpack.c.bf16 %v1468_v6, %v1466_v5 }
 0x439   : > { %v1469_v13 = vmul.f32 %v1455_v8, %v1427_v48 }
 0x43a   : > { %v1470_v12 = vmul.f32 %v1456_v0, %v1428_v50  ;;  %2534 = vmatprep.subr.bf16.mxu0 %v2533_v11 }
 0x43b   : > { %2536 = vmatpush1.bf16.msra.mxu0 %v2535_v10 }
 0x43c   : > { %2444 = vmatprep.subr.msk.mxu0 %vm823_vm1, %v1470_v12 }
 0x43f   : > { %2445 = vmatpush1.msk.msra.mxu0 %vm823_vm1, %v1469_v13  ;;  %v1518_v13 = vpop.permute.xlu1 %1517 }
 0x440   : > { %2446 = vmatmul.mubr.msk.f32.vlgmr.msra.gmra.mrb[22].mxu0 %vm801_vm2, %v1471_v14 }
 0x441   : > { %1617 = vmatprep.mubr.f32.mxu0 %v2885_v7 }
 0x444   : > { %2447 = vmatmul.mubr.msk.f32.gmra.mrb[24].mxu0 %vm801_vm2, %v1472_v15 }
 0x445   : > { %1623 = vmatprep.mubr.f32.mxu0 %v2885_v7 }
 0x448   : > { %2448 = vmatmul.mubr.msk.f32.gmra.mrb[26].mxu0 %vm801_vm2, %v1473_v16 }
 0x449   : > { %1629 = vmatprep.mubr.f32.mxu0 %v2885_v7 }
 0x44c   : > { %2449 = vmatmul.mubr.msk.f32.gmra.mrb[28].mxu0 %vm801_vm2, %v1474_v17 }
 0x44d   : > { %1635 = vmatprep.mubr.f32.mxu0 %v2885_v7 }
 0x450   : > { %2450 = vmatmul.mubr.msk.f32.gmra.mrb[30].mxu0 %vm801_vm2, %v1475_v18 }
 0x451   : > { %1641 = vmatprep.mubr.f32.mxu0 %v2885_v7 }
 0x454   : > { %2451 = vmatmul.mubr.msk.f32.gmra.mrb[32].mxu0 %vm801_vm2, %v1476_v19 }
 0x455   : > { %1647 = vmatprep.mubr.f32.mxu0 %v2885_v7 }
 0x458   : > { %2452 = vmatmul.mubr.msk.f32.gmra.mrb[34].mxu0 %vm801_vm2, %v1477_v20 }
 0x459   : > { %2089 = vmatprep.mubr.f32.mxu0 %v2885_v7 }
 0x513   : > { %v1613_v24 = vpop.f32.mrb[22].mxu0 }
 0x514   : > { %v1614_v25 = vadd.f32 %v1613_v24, %v1488_v22  ;;  %v1615_v26 = vpop.f32.mrb[23].mxu0 }
 0x515   : > { %v1616_v27 = vadd.f32 %v1615_v26, %v1488_v22 }
 0x516   : > { %v1654_v21 = vmul.f32 0.5, %v1614_v25 }
 0x517   : > { %v1655_v29 = vmul.f32 0.5, %v1616_v27  ;;  %v1619_v30 = vpop.f32.mrb[24].mxu0 }
 0x518   : > { %2735 = vtanh.f32 %v1654_v21  ;;  %v1620_v31 = vadd.f32 %v1619_v30, %v1493_v28  ;;  %v1621_v23 = vpop.f32.mrb[25].mxu0 }
 0x519   : > { %2737 = vtanh.f32 %v1655_v29  ;;  %v1622_v32 = vadd.f32 %v1621_v23, %v1493_v28 }
 0x51a   : > { %v1656_v33 = vmul.f32 0.5, %v1620_v31 }
 0x51b   : > { %v1657_v35 = vmul.f32 0.5, %v1622_v32  ;;  %v1625_v36 = vpop.f32.mrb[26].mxu0 }
 0x51c   : > { %2739 = vtanh.f32 %v1656_v33  ;;  %v1626_v37 = vadd.f32 %v1625_v36, %v1498_v34  ;;  %v1627_v38 = vpop.f32.mrb[27].mxu0 }
 0x51d   : > { %2741 = vtanh.f32 %v1657_v35  ;;  %v1628_v39 = vadd.f32 %v1627_v38, %v1498_v34 }
 0x51e   : > { %v3392_v40 = vmul.f32 0.5, %v1626_v37 }
 0x51f   : > { %v3394_v42 = vmul.f32 0.5, %v1628_v39  ;;  %v1631_v44 = vpop.f32.mrb[28].mxu0 }
 0x520   : > { %2743 = vtanh.f32 %v3392_v40  ;;  %v1632_v46 = vadd.f32 %v1631_v44, %v1503_v41  ;;  %v1633_v47 = vpop.f32.mrb[29].mxu0 }
 0x521   : > { %2745 = vtanh.f32 %v3394_v42  ;;  %v1634_v48 = vadd.f32 %v1633_v47, %v1503_v41 }
 0x522   : > { %v2736_v49 = vpop.eup %2735  ;;  %v1660_v43 = vmul.f32 0.5, %v1632_v46 }
 0x523   : > { %v2738_v50 = vpop.eup %2737  ;;  %v1661_v52 = vmul.f32 0.5, %v1634_v48  ;;  %v1637_v53 = vpop.f32.mrb[30].mxu0  ;;  %v1682_v55 = vadd.f32 1.0, %v2736_v49 }
 0x524   : > { %2747 = vtanh.f32 %v1660_v43  ;;  %v1638_v45 = vadd.f32 %v1637_v53, %v1508_v51  ;;  %v1639_v54 = vpop.f32.mrb[31].mxu0  ;;  %v1683_v58 = vadd.f32 1.0, %v2738_v50 }
 0x525   : > { %2749 = vtanh.f32 %v1661_v52  ;;  %v1640_v56 = vadd.f32 %v1639_v54, %v1508_v51  ;;  %v1696_v5 = vmul.f32 %v1682_v55, %v1654_v21  ;;  %v1710_v55 = vld [vmem:[%s3557_s10] sm:$0xff] }
 0x526   : > { %v2740_v57 = vpop.eup %2739  ;;  %v1662_v59 = vmul.f32 0.5, %v1638_v45  ;;  %v1697_v0 = vmul.f32 %v1683_v58, %v1655_v29  ;;  %v1713_v58 = vld [vmem:[%s3557_s10 + $0x18] sm:$0xff] }
 0x527   : > { %v2742_v60 = vpop.eup %2741  ;;  %v1684_v63 = vadd.f32 1.0, %v2740_v57  ;;  %v1663_v2 = vmul.f32 0.5, %v1640_v56  ;;  %v1643_v3 = vpop.f32.mrb[32].mxu0  ;;  %v1711_v56 = vld [vmem:[%s3557_s10 + $0x8] sm:$0xff]  ;;  %v1712_v57 = vld [vmem:[%s3557_s10 + $0x10] sm:$0xff] }
 0x528   : > { %v1685_v1 = vadd.f32 1.0, %v2742_v60  ;;  %2751 = vtanh.f32 %v1662_v59  ;;  %v1644_v4 = vadd.f32 %v1643_v3, %v1513_v61  ;;  %v1645_v62 = vpop.f32.mrb[33].mxu0  ;;  %v1715_v60 = vld [vmem:[%s3557_s10 + $0x28] sm:$0xff] }
 0x529   : > { %v1698_v6 = vmul.f32 %v1684_v63, %v1656_v33  ;;  %2753 = vtanh.f32 %v1663_v2  ;;  %v1646_v9 = vadd.f32 %v1645_v62, %v1513_v61  ;;  %v1716_v61 = vld [vmem:[%s3557_s10 + $0x30] sm:$0x3]  ;;  %v1727_v63 = vpop.permute.xlu0 %1726 }
 0x52a   : > { %v2744_v10 = vpop.eup %2743  ;;  %v1699_v11 = vmul.f32 %v1685_v1, %v1657_v35  ;;  %v1664_v8 = vmul.f32 0.5, %v1644_v4 }
 0x52b   : > { %v2746_v12 = vpop.eup %2745  ;;  %v2539_v14 = vpack.c.bf16 %v1698_v6, %v1696_v5  ;;  %v1665_v15 = vmul.f32 0.5, %v1646_v9  ;;  %v1649_v16 = vpop.f32.mrb[34].mxu0  ;;  %v1686_v20 = vadd.f32 1.0, %v2744_v10 }
 0x52c   : > { %2755 = vtanh.f32 %v1664_v8  ;;  %v1650_v17 = vadd.f32 %v1649_v16, %v1518_v13  ;;  %v1651_v18 = vpop.f32.mrb[35].mxu0  ;;  %v2537_v19 = vpack.c.bf16 %v1699_v11, %v1697_v0  ;;  %v1687_v25 = vadd.f32 1.0, %v2746_v12  ;;  %v1732_v5 = vpop.permute.xlu1 %1731 }
 0x52d   : > { %2757 = vtanh.f32 %v1665_v15  ;;  %v1652_v22 = vadd.f32 %v1651_v18, %v1518_v13  ;;  %v1700_v30 = vmul.f32 %v1686_v20, %v3392_v40  ;;  %v1737_v12 = vpop.permute.xlu0 %1736 }
 0x52e   : > { %v2748_v24 = vpop.eup %2747  ;;  %v1666_v26 = vmul.f32 0.5, %v1650_v17  ;;  %2538 = vmatprep.subr.bf16.mxu1 %v2537_v19  ;;  %v1701_v32 = vmul.f32 %v1687_v25, %v3394_v42 }
 0x52f   : > { %v2750_v27 = vpop.eup %2749  ;;  %v1688_v21 = vadd.f32 1.0, %v2748_v24  ;;  %v1667_v28 = vmul.f32 0.5, %v1652_v22  ;;  %2540 = vmatpush1.bf16.msra.mxu1 %v2539_v14 }
 0x530   : > { %v1689_v29 = vadd.f32 1.0, %v2750_v27  ;;  %2759 = vtanh.f32 %v1666_v26  ;;  %v1742_v19 = vpop.permute.xlu1 %1741 }
 0x531   : > { %v1702_v31 = vmul.f32 %v1688_v21, %v1660_v43  ;;  %2761 = vtanh.f32 %v1667_v28 }
 0x532   : > { %v2752_v23 = vpop.eup %2751  ;;  %v1703_v33 = vmul.f32 %v1689_v29, %v1661_v52  ;;  %v1747_v29 = vpop.permute.xlu0 %1746 }
 0x533   : > { %v2754_v34 = vpop.eup %2753  ;;  %v2543_v35 = vpack.c.bf16 %v1702_v31, %v1700_v30  ;;  %v1690_v37 = vadd.f32 1.0, %v2752_v23 }
 0x534   : > { %v2541_v36 = vpack.c.bf16 %v1703_v33, %v1701_v32  ;;  %v1691_v39 = vadd.f32 1.0, %v2754_v34 }
 0x535   : > { %v1704_v47 = vmul.f32 %v1690_v37, %v1662_v59  ;;  %v1714_v59 = vld [vmem:[%s3557_s10 + $0x20] sm:$0xff] }
 0x536   : > { %v2756_v38 = vpop.eup %2755  ;;  %2542 = vmatprep.subr.bf16.mxu1 %v2541_v36  ;;  %v1705_v49 = vmul.f32 %v1691_v39, %v1663_v2  ;;  %v1752_v39 = vpop.permute.xlu1 %1751 }
 0x537   : > { %v2758_v41 = vpop.eup %2757  ;;  %v1692_v44 = vadd.f32 1.0, %v2756_v38  ;;  %2544 = vmatpush1.bf16.msra.mxu1 %v2543_v35 }
 0x538   : > { %v1693_v46 = vadd.f32 1.0, %v2758_v41 }
 0x539   : > { %v1706_v48 = vmul.f32 %v1692_v44, %v1664_v8 }
 0x53a   : > { %v2760_v40 = vpop.eup %2759  ;;  %v1707_v43 = vmul.f32 %v1693_v46, %v1665_v15 }
 0x53b   : > { %v2762_v50 = vpop.eup %2761  ;;  %v2547_v51 = vpack.c.bf16 %v1706_v48, %v1704_v47  ;;  %v1694_v53 = vadd.f32 1.0, %v2760_v40 }
 0x53c   : > { %v1695_v42 = vadd.f32 1.0, %v2762_v50  ;;  %v2545_v52 = vpack.c.bf16 %v1707_v43, %v1705_v49 }
 0x53d   : > { %v1708_v54 = vmul.f32 %v1694_v53, %v1666_v26 }
 0x53e   : > { %v1709_v45 = vmul.f32 %v1695_v42, %v1667_v28  ;;  %2546 = vmatprep.subr.bf16.mxu1 %v2545_v52 }
 0x53f   : > { %2548 = vmatpush1.bf16.msra.mxu1 %v2547_v51 }
 0x540   : > { %2453 = vmatprep.subr.msk.mxu1 %vm823_vm1, %v1709_v45 }
 0x543   : > { %2454 = vmatpush1.msk.msra.mxu1 %vm823_vm1, %v1708_v54  ;;  %v1757_v54 = vpop.permute.xlu0 %1756 }
 0x544   : > { %2455 = vmatmul.mubr.msk.f32.vlgmr.msra.gmra.mrb[34].mxu1 %vm801_vm2, %v1710_v55 }
 0x545   : > { %1856 = vmatprep.mubr.f32.mxu1 %v2885_v7 }
 0x548   : > { %2456 = vmatmul.mubr.msk.f32.gmra.mrb[36].mxu1 %vm801_vm2, %v1711_v56 }
 0x549   : > { %1862 = vmatprep.mubr.f32.mxu1 %v2885_v7 }
 0x54c   : > { %2457 = vmatmul.mubr.msk.f32.gmra.mrb[38].mxu1 %vm801_vm2, %v1712_v57 }
 0x54d   : > { %1868 = vmatprep.mubr.f32.mxu1 %v2885_v7 }
 0x550   : > { %2458 = vmatmul.mubr.msk.f32.gmra.mrb[40].mxu1 %vm801_vm2, %v1713_v58 }
 0x551   : > { %1874 = vmatprep.mubr.f32.mxu1 %v2885_v7 }
 0x554   : > { %2459 = vmatmul.mubr.msk.f32.gmra.mrb[42].mxu1 %vm801_vm2, %v1714_v59 }
 0x555   : > { %1880 = vmatprep.mubr.f32.mxu1 %v2885_v7 }
 0x558   : > { %2460 = vmatmul.mubr.msk.f32.gmra.mrb[44].mxu1 %vm801_vm2, %v1715_v60 }
 0x559   : > { %1886 = vmatprep.mubr.f32.mxu1 %v2885_v7 }
 0x55c   : > { %2461 = vmatmul.mubr.msk.f32.gmra.mrb[46].mxu1 %vm801_vm2, %v1716_v61 }
 0x55d   : > { %2272 = vmatprep.mubr.f32.mxu1 %v2885_v7 }
 0x617   : > { %v1852_v2 = vpop.f32.mrb[34].mxu1 }
 0x618   : > { %v1853_v3 = vadd.f32 %v1852_v2, %v1727_v63  ;;  %v1854_v1 = vpop.f32.mrb[35].mxu1 }
 0x619   : > { %v1855_v4 = vadd.f32 %v1854_v1, %v1727_v63 }
 0x61a   : > { %v1893_v62 = vmul.f32 0.5, %v1853_v3 }
 0x61b   : > { %v1894_v6 = vmul.f32 0.5, %v1855_v4  ;;  %v1858_v9 = vpop.f32.mrb[36].mxu1 }
 0x61c   : > { %2763 = vtanh.f32 %v1893_v62  ;;  %v1859_v10 = vadd.f32 %v1858_v9, %v1732_v5  ;;  %v1860_v0 = vpop.f32.mrb[37].mxu1 }
 0x61d   : > { %2765 = vtanh.f32 %v1894_v6  ;;  %v1861_v11 = vadd.f32 %v1860_v0, %v1732_v5 }
 0x61e   : > { %v1895_v8 = vmul.f32 0.5, %v1859_v10 }
 0x61f   : > { %v1896_v13 = vmul.f32 0.5, %v1861_v11  ;;  %v1864_v14 = vpop.f32.mrb[38].mxu1 }
 0x620   : > { %2767 = vtanh.f32 %v1895_v8  ;;  %v1865_v15 = vadd.f32 %v1864_v14, %v1737_v12  ;;  %v1866_v16 = vpop.f32.mrb[39].mxu1 }
 0x621   : > { %2769 = vtanh.f32 %v1896_v13  ;;  %v1867_v17 = vadd.f32 %v1866_v16, %v1737_v12 }
 0x622   : > { %v3437_v18 = vmul.f32 0.5, %v1865_v15 }
 0x623   : > { %v3439_v20 = vmul.f32 0.5, %v1867_v17  ;;  %v1870_v22 = vpop.f32.mrb[40].mxu1 }
 0x624   : > { %2771 = vtanh.f32 %v3437_v18  ;;  %v1871_v24 = vadd.f32 %v1870_v22, %v1742_v19  ;;  %v1872_v25 = vpop.f32.mrb[41].mxu1 }
 0x625   : > { %2773 = vtanh.f32 %v3439_v20  ;;  %v1873_v26 = vadd.f32 %v1872_v25, %v1742_v19 }
 0x626   : > { %v2764_v27 = vpop.eup %2763  ;;  %v1899_v21 = vmul.f32 0.5, %v1871_v24 }
 0x627   : > { %v2766_v28 = vpop.eup %2765  ;;  %v1900_v30 = vmul.f32 0.5, %v1873_v26  ;;  %v1876_v31 = vpop.f32.mrb[42].mxu1  ;;  %v1921_v33 = vadd.f32 1.0, %v2764_v27 }
 0x628   : > { %2775 = vtanh.f32 %v1899_v21  ;;  %v1877_v23 = vadd.f32 %v1876_v31, %v1747_v29  ;;  %v1878_v32 = vpop.f32.mrb[43].mxu1  ;;  %v1922_v36 = vadd.f32 1.0, %v2766_v28 }
 0x629   : > { %2777 = vtanh.f32 %v1900_v30  ;;  %v1879_v34 = vadd.f32 %v1878_v32, %v1747_v29  ;;  %v1935_v49 = vmul.f32 %v1921_v33, %v1893_v62  ;;  %v1949_v33 = vld [vmem:[%s3559_s12] sm:$0xff] }
 0x62a   : > { %v2768_v35 = vpop.eup %2767  ;;  %v1901_v37 = vmul.f32 0.5, %v1877_v23  ;;  %v1936_v42 = vmul.f32 %v1922_v36, %v1894_v6  ;;  %v1952_v36 = vld [vmem:[%s3559_s12 + $0x18] sm:$0xff] }
 0x62b   : > { %v2770_v38 = vpop.eup %2769  ;;  %v1923_v41 = vadd.f32 1.0, %v2768_v35  ;;  %v1902_v44 = vmul.f32 0.5, %v1879_v34  ;;  %v1882_v46 = vpop.f32.mrb[44].mxu1  ;;  %v1950_v34 = vld [vmem:[%s3559_s12 + $0x8] sm:$0xff]  ;;  %v1951_v35 = vld [vmem:[%s3559_s12 + $0x10] sm:$0xff] }
 0x62c   : > { %v1924_v47 = vadd.f32 1.0, %v2770_v38  ;;  %2779 = vtanh.f32 %v1901_v37  ;;  %v1883_v48 = vadd.f32 %v1882_v46, %v1752_v39  ;;  %v1884_v40 = vpop.f32.mrb[45].mxu1  ;;  %v1954_v38 = vld [vmem:[%s3559_s12 + $0x28] sm:$0xff] }
 0x62d   : > { %v1937_v43 = vmul.f32 %v1923_v41, %v1895_v8  ;;  %2781 = vtanh.f32 %v1902_v44  ;;  %v1885_v50 = vadd.f32 %v1884_v40, %v1752_v39  ;;  %v1955_v39 = vld [vmem:[%s3559_s12 + $0x30] sm:$0x3]  ;;  %v1966_v41 = vpop.permute.xlu1 %1965 }
 0x62e   : > { %v2772_v51 = vpop.eup %2771  ;;  %v1938_v52 = vmul.f32 %v1924_v47, %v1896_v13  ;;  %v1903_v53 = vmul.f32 0.5, %v1883_v48 }
 0x62f   : > { %v2774_v45 = vpop.eup %2773  ;;  %v2551_v55 = vpack.c.bf16 %v1937_v43, %v1935_v49  ;;  %v1904_v56 = vmul.f32 0.5, %v1885_v50  ;;  %v1888_v57 = vpop.f32.mrb[46].mxu1  ;;  %v1925_v61 = vadd.f32 1.0, %v2772_v51 }
 0x630   : > { %2783 = vtanh.f32 %v1903_v53  ;;  %v1889_v58 = vadd.f32 %v1888_v57, %v1757_v54  ;;  %v1890_v59 = vpop.f32.mrb[47].mxu1  ;;  %v2549_v60 = vpack.c.bf16 %v1938_v52, %v1936_v42  ;;  %v1926_v3 = vadd.f32 1.0, %v2774_v45  ;;  %v1971_v49 = vpop.permute.xlu0 %1970 }
 0x631   : > { %2785 = vtanh.f32 %v1904_v56  ;;  %v1891_v63 = vadd.f32 %v1890_v59, %v1757_v54  ;;  %v1939_v9 = vmul.f32 %v1925_v61, %v3437_v18 }
 0x632   : > { %v2776_v2 = vpop.eup %2775  ;;  %v1905_v1 = vmul.f32 0.5, %v1889_v58  ;;  %2550 = vmatprep.subr.bf16.mxu0 %v2549_v60  ;;  %v1940_v11 = vmul.f32 %v1926_v3, %v3439_v20 }
 0x633   : > { %v2778_v4 = vpop.eup %2777  ;;  %v1927_v62 = vadd.f32 1.0, %v2776_v2  ;;  %v1906_v5 = vmul.f32 0.5, %v1891_v63  ;;  %2552 = vmatpush1.bf16.msra.mxu0 %v2551_v55 }
 0x634   : > { %v1928_v6 = vadd.f32 1.0, %v2778_v4  ;;  %2787 = vtanh.f32 %v1905_v1  ;;  %v1981_v59 = vpop.permute.xlu0 %1980 }
 0x635   : > { %v1941_v10 = vmul.f32 %v1927_v62, %v1899_v21  ;;  %2789 = vtanh.f32 %v1906_v5 }
 0x636   : > { %v2780_v0 = vpop.eup %2779  ;;  %v1942_v8 = vmul.f32 %v1928_v6, %v1900_v30 }
 0x637   : > { %v2782_v12 = vpop.eup %2781  ;;  %v2555_v13 = vpack.c.bf16 %v1941_v10, %v1939_v9  ;;  %v1929_v15 = vadd.f32 1.0, %v2780_v0 }
 0x638   : > { %v2553_v14 = vpack.c.bf16 %v1942_v8, %v1940_v11  ;;  %v1930_v17 = vadd.f32 1.0, %v2782_v12 }
 0x639   : > { %v1943_v25 = vmul.f32 %v1929_v15, %v1901_v37  ;;  %v1953_v37 = vld [vmem:[%s3559_s12 + $0x20] sm:$0xff] }
 0x63a   : > { %v2784_v16 = vpop.eup %2783  ;;  %2554 = vmatprep.subr.bf16.mxu0 %v2553_v14  ;;  %v1944_v27 = vmul.f32 %v1930_v17, %v1902_v44 }
 0x63b   : > { %v2786_v19 = vpop.eup %2785  ;;  %v1931_v22 = vadd.f32 1.0, %v2784_v16  ;;  %2556 = vmatpush1.bf16.msra.mxu0 %v2555_v13  ;;  %v1991_v16 = vpop.permute.xlu0 %1990 }
 0x63c   : > { %v1932_v24 = vadd.f32 1.0, %v2786_v19 }
 0x63d   : > { %v1945_v26 = vmul.f32 %v1931_v22, %v1903_v53  ;;  %v1976_v53 = vpop.permute.xlu1 %1975 }
 0x63e   : > { %v2788_v18 = vpop.eup %2787  ;;  %v1946_v21 = vmul.f32 %v1932_v24, %v1904_v56 }
 0x63f   : > { %v2790_v28 = vpop.eup %2789  ;;  %v2559_v29 = vpack.c.bf16 %v1945_v26, %v1943_v25  ;;  %v1933_v31 = vadd.f32 1.0, %v2788_v18 }
 0x640   : > { %v1934_v20 = vadd.f32 1.0, %v2790_v28  ;;  %v2557_v30 = vpack.c.bf16 %v1946_v21, %v1944_v27 }
 0x641   : > { %v1947_v32 = vmul.f32 %v1933_v31, %v1905_v1 }
 0x642   : > { %v1948_v23 = vmul.f32 %v1934_v20, %v1906_v5  ;;  %2558 = vmatprep.subr.bf16.mxu0 %v2557_v30  ;;  %v1986_v5 = vpop.permute.xlu1 %1985 }
 0x643   : > { %2560 = vmatpush1.bf16.msra.mxu0 %v2559_v29 }
 0x644   : > { %2462 = vmatprep.subr.msk.mxu0 %vm823_vm1, %v1948_v23 }
 0x646   : > { %v1996_v23 = vpop.permute.xlu1 %1995 }
 0x647   : > { %2463 = vmatpush1.msk.msra.mxu0 %vm823_vm1, %v1947_v32 }
 0x648   : > { %2464 = vmatmul.mubr.msk.f32.vlgmr.msra.gmra.mrb[36].mxu0 %vm801_vm2, %v1949_v33 }
 0x649   : > { %2095 = vmatprep.mubr.f32.mxu0 %v2885_v7 }
 0x64c   : > { %2465 = vmatmul.mubr.msk.f32.gmra.mrb[38].mxu0 %vm801_vm2, %v1950_v34 }
 0x64d   : > { %2101 = vmatprep.mubr.f32.mxu0 %v2885_v7 }
 0x650   : > { %2466 = vmatmul.mubr.msk.f32.gmra.mrb[40].mxu0 %vm801_vm2, %v1951_v35 }
 0x651   : > { %2107 = vmatprep.mubr.f32.mxu0 %v2885_v7 }
 0x654   : > { %2467 = vmatmul.mubr.msk.f32.gmra.mrb[42].mxu0 %vm801_vm2, %v1952_v36 }
 0x655   : > { %2113 = vmatprep.mubr.f32.mxu0 %v2885_v7 }
 0x658   : > { %2468 = vmatmul.mubr.msk.f32.gmra.mrb[44].mxu0 %vm801_vm2, %v1953_v37 }
 0x659   : > { %2119 = vmatprep.mubr.f32.mxu0 %v2885_v7 }
 0x65c   : > { %2469 = vmatmul.mubr.msk.f32.gmra.mrb[46].mxu0 %vm801_vm2, %v1954_v38 }
 0x65d   : > { %2125 = vmatprep.mubr.f32.mxu0 %v2885_v7 }
 0x660   : > { %2470 = vmatmul.mubr.msk.f32.gmra.mrb[48].mxu0 %vm801_vm2, %v1955_v39 }
 0x71b   : > { %v2091_v44 = vpop.f32.mrb[36].mxu0 }
 0x71c   : > { %v2092_v46 = vadd.f32 %v2091_v44, %v1966_v41  ;;  %v2093_v47 = vpop.f32.mrb[37].mxu0 }
 0x71d   : > { %v2094_v48 = vadd.f32 %v2093_v47, %v1966_v41 }
 0x71e   : > { %v2132_v40 = vmul.f32 0.5, %v2092_v46 }
 0x71f   : > { %v2133_v43 = vmul.f32 0.5, %v2094_v48  ;;  %v2097_v50 = vpop.f32.mrb[38].mxu0 }
 0x720   : > { %2791 = vtanh.f32 %v2132_v40  ;;  %v2098_v51 = vadd.f32 %v2097_v50, %v1971_v49  ;;  %v2099_v42 = vpop.f32.mrb[39].mxu0 }
 0x721   : > { %2793 = vtanh.f32 %v2133_v43  ;;  %v2100_v7 = vadd.f32 %v2099_v42, %v1971_v49 }
 0x722   : > { %v2134_v52 = vmul.f32 0.5, %v2098_v51 }
 0x723   : > { %v2135_v45 = vmul.f32 0.5, %v2100_v7  ;;  %v2103_v54 = vpop.f32.mrb[40].mxu0 }
 0x724   : > { %2795 = vtanh.f32 %v2134_v52  ;;  %v2104_v55 = vadd.f32 %v2103_v54, %v1976_v53  ;;  %v2105_v56 = vpop.f32.mrb[41].mxu0 }
 0x725   : > { %2797 = vtanh.f32 %v2135_v45  ;;  %v2106_v57 = vadd.f32 %v2105_v56, %v1976_v53 }
 0x726   : > { %v3481_v58 = vmul.f32 0.5, %v2104_v55 }
 0x727   : > { %v3483_v60 = vmul.f32 0.5, %v2106_v57  ;;  %v2109_v61 = vpop.f32.mrb[42].mxu0 }
 0x728   : > { %2799 = vtanh.f32 %v3481_v58  ;;  %v2110_v63 = vadd.f32 %v2109_v61, %v1981_v59  ;;  %v2111_v2 = vpop.f32.mrb[43].mxu0 }
 0x729   : > { %2801 = vtanh.f32 %v3483_v60  ;;  %v2112_v3 = vadd.f32 %v2111_v2, %v1981_v59 }
 0x72a   : > { %v2792_v1 = vpop.eup %2791  ;;  %v2138_v4 = vmul.f32 0.5, %v2110_v63 }
 0x72b   : > { %v2794_v62 = vpop.eup %2793  ;;  %v2139_v6 = vmul.f32 0.5, %v2112_v3  ;;  %v2115_v9 = vpop.f32.mrb[44].mxu0  ;;  %v2160_v11 = vadd.f32 1.0, %v2792_v1 }
 0x72c   : > { %2803 = vtanh.f32 %v2138_v4  ;;  %v2116_v10 = vadd.f32 %v2115_v9, %v1986_v5  ;;  %v2117_v0 = vpop.f32.mrb[45].mxu0  ;;  %v2161_v13 = vadd.f32 1.0, %v2794_v62 }
 0x72d   : > { %2805 = vtanh.f32 %v2139_v6  ;;  %v2118_v8 = vadd.f32 %v2117_v0, %v1986_v5  ;;  %v2174_v18 = vmul.f32 %v2160_v11, %v2132_v40  ;;  %v2188_v0 = vld [vmem:[%s3561_s14] sm:$0x1]  ;;  %v2195_v11 = vlaneseq }
 0x72e   : > { %v2796_v12 = vpop.eup %2795  ;;  %v2140_v14 = vmul.f32 0.5, %v2116_v10  ;;  %v2175_v29 = vmul.f32 %v2161_v13, %v2133_v43  ;;  %v2193_v13 = vpop.permute.xlu0 %2192 }
 0x72f   : > { %v2798_v15 = vpop.eup %2797  ;;  %v2162_v17 = vadd.f32 1.0, %v2796_v12  ;;  %v2141_v19 = vmul.f32 0.5, %v2118_v8  ;;  %v2121_v22 = vpop.f32.mrb[46].mxu0  ;;  %v2196_v8 = vshrl.u32 %v2195_v11, 7  ;;  %vm2320_vm3 = vcmp.lt.s32.totalorder %v2195_v11, 256 }
 0x730   : > { %v2163_v24 = vadd.f32 1.0, %v2798_v15  ;;  %2807 = vtanh.f32 %v2140_v14  ;;  %v2122_v25 = vadd.f32 %v2121_v22, %v1991_v16  ;;  %v2123_v26 = vpop.f32.mrb[47].mxu0 }
 0x731   : > { %v2176_v27 = vmul.f32 %v2162_v17, %v2134_v52  ;;  %2809 = vtanh.f32 %v2141_v19  ;;  %v2124_v21 = vadd.f32 %v2123_v26, %v1991_v16  ;;  %v2197_v12 = vsub.s32 0, %v2196_v8  ;;  %v2820_v17 = vld [vmem:[%s3039_s20 + $0x8] sm:$0xff] }
 0x732   : > { %v2800_v28 = vpop.eup %2799  ;;  %v2177_v20 = vmul.f32 %v2163_v24, %v2135_v45  ;;  %v2142_v30 = vmul.f32 0.5, %v2122_v25  ;;  %v2477_v22 = vadd.f32 -10.2, %v2820_v17  ;;  %v2887_v26 = vmov 1966171168  }
 0x733   : > { %v2802_v31 = vpop.eup %2801  ;;  %v2563_v32 = vpack.c.bf16 %v2176_v27, %v2174_v18  ;;  %v2143_v33 = vmul.f32 0.5, %v2124_v21  ;;  %v2127_v34 = vpop.f32.mrb[48].mxu0  ;;  %v2164_v38 = vadd.f32 1.0, %v2800_v28  ;;  %v2198_v24 = vrot.slane %v2193_v13, %v2197_v12 }
 0x734   : > { %2811 = vtanh.f32 %v2142_v30  ;;  %v2128_v35 = vadd.f32 %v2127_v34, %v1996_v23  ;;  %v2129_v36 = vpop.f32.mrb[49].mxu0  ;;  %v2561_v37 = vpack.c.bf16 %v2177_v20, %v2175_v29  ;;  %v2165_v44 = vadd.f32 1.0, %v2802_v31 }
 0x735   : > { %2813 = vtanh.f32 %v2143_v33  ;;  %v2130_v39 = vadd.f32 %v2129_v36, %v1996_v23  ;;  %v2178_v43 = vmul.f32 %v2164_v38, %v3481_v58  ;;  %v2303_v18 = vunpack.c.l.s4 %v2887_v26 }
 0x736   : > { %v2804_v41 = vpop.eup %2803  ;;  %v2144_v46 = vmul.f32 0.5, %v2128_v35  ;;  %2562 = vmatprep.subr.bf16.mxu1 %v2561_v37  ;;  %v2179_v42 = vmul.f32 %v2165_v44, %v3483_v60  ;;  %v2280_v21 = vsub.f32 10.2, %v2820_v17 }
 0x737   : > { %v2806_v47 = vpop.eup %2805  ;;  %v2166_v48 = vadd.f32 1.0, %v2804_v41  ;;  %v2145_v40 = vmul.f32 0.5, %v2130_v39  ;;  %2564 = vmatpush1.bf16.msra.mxu1 %v2563_v32 }
 0x738   : > { %v2167_v49 = vadd.f32 1.0, %v2806_v47  ;;  %2815 = vtanh.f32 %v2144_v46  ;;  %v2282_v34 = vmul.f32 0.1, %v2280_v21 }
 0x739   : > { %v2180_v50 = vmul.f32 %v2166_v48, %v2138_v4  ;;  %2817 = vtanh.f32 %v2145_v40 }
 0x73a   : > { %v2808_v51 = vpop.eup %2807  ;;  %v2181_v7 = vmul.f32 %v2167_v49, %v2139_v6 }
 0x73b   : > { %v2810_v52 = vpop.eup %2809  ;;  %v2567_v53 = vpack.c.bf16 %v2180_v50, %v2178_v43  ;;  %v2168_v54 = vadd.f32 1.0, %v2808_v51 }
 0x73c   : > { %v2565_v45 = vpack.c.bf16 %v2181_v7, %v2179_v42  ;;  %v2169_v56 = vadd.f32 1.0, %v2810_v52 }
 0x73d   : > { %v2182_v63 = vmul.f32 %v2168_v54, %v2140_v14  ;;  %v2819_v14 = vld [vmem:[%s3039_s20] sm:$0xff]  ;;  %s2409_s20 = sshll.u32 %s3034_s19, 1 }
 0x73e   : > { %v2812_v55 = vpop.eup %2811  ;;  %2566 = vmatprep.subr.bf16.mxu1 %v2565_v45  ;;  %v2183_v3 = vmul.f32 %v2169_v56, %v2141_v19  ;;  %v2474_v15 = vadd.f32 -0.2, %v2819_v14  ;;  %v2476_v16 = vadd.f32 -10.2, %v2819_v14  ;;  %v2475_v19 = vadd.f32 -0.2, %v2820_v17 }
 0x73f   : > { %v2814_v57 = vpop.eup %2813  ;;  %v2170_v59 = vadd.f32 1.0, %v2812_v55  ;;  %2568 = vmatpush1.bf16.msra.mxu1 %v2567_v53  ;;  %v2279_v25 = vsub.f32 10.2, %v2819_v14  ;;  %s551_s21 = scalar_lea.vmem [#allocation4], %s2409_s20  ;;  %s2825_s20 = sshll.u32 %s2888_s24, 4  ;;  %s2826_s20 = int_to_ptr.vmem [resolvable:$false] %s2825_s20 }
 0x740   : > { %v2171_v61 = vadd.f32 1.0, %v2814_v57  ;;  %v2287_v29 = vmul.f32 %v2476_v16, %v2474_v15  ;;  %v2288_v31 = vmul.f32 %v2477_v22, %v2475_v19  ;;  %s2338_s22 = sshll.u32 %s551_s21, 4  ;;  %s2827_s25 = scalar_lea.vmem %s2826_s20, 64  ;;  %s3505_s22 = int_to_ptr.vmem [resolvable:$true] %s2338_s22 }
 0x741   : > { %v2184_v2 = vmul.f32 %v2170_v59, %v2142_v30  ;;  %v2281_v23 = vmul.f32 0.1, %v2279_v25  ;;  %s2821_s1 = scalar_lea.vmem %s3505_s22, 32  ;;  %p2828_p2 = scmp.lt.s32.totalorder %s3505_s22, %s2826_s20 }
 0x742   : > { %v2816_v58 = vpop.eup %2815  ;;  %v2185_v1 = vmul.f32 %v2171_v61, %v2143_v33  ;;  %v2304_v33 = vunpack.c.0.s8 %v2303_v18  ;;  %p2822_p13 = scmp.ne.s32.totalorder %s3505_s22, %s2821_s1  ;;  %p2829_p3 = scmp.lt.s32.totalorder %s2827_s25, %s2821_s1 }
 0x743   : > { %v2818_v4 = vpop.eup %2817  ;;  %v2571_v62 = vpack.c.bf16 %v2184_v2, %v2182_v63  ;;  %v2172_v6 = vadd.f32 1.0, %v2816_v58 }
 0x744   : > { %v2173_v60 = vadd.f32 1.0, %v2818_v4  ;;  %v2569_v5 = vpack.c.bf16 %v2185_v1, %v2183_v3  ;;  %v2307_v39 = vsub.s32 %v2304_v33, %v2196_v8  ;;  %p2823_p0 = pnand %p2822_p13, %p3015_p6  ;;  %p2830_p4 = por %p2829_p3, %p2828_p2 }
 0x745   : > { %v2186_v10 = vmul.f32 %v2172_v6, %v2144_v46 }
 0x746   : > { %v2187_v9 = vmul.f32 %v2173_v60, %v2145_v40  ;;  %2570 = vmatprep.subr.bf16.mxu1 %v2569_v5  ;;  %p2824_p1 = pneg %p2823_p0 }
 0x747   : > { %2572 = vmatpush1.bf16.msra.mxu1 %v2571_v62 }
 0x748   : > { %2471 = vmatprep.subr.msk.mxu1 %vm823_vm1, %v2187_v9  ;;  %p2831_p5 = pnand %p2830_p4, %p2824_p1 }
 0x74b   : > { %2472 = vmatpush1.msk.msra.mxu1 %vm823_vm1, %v2186_v10 }
 0x74c   : > { %2473 = vmatmul.mubr.msk.f32.vlgmr.msra.gmra.mrb[48].mxu1 %vm801_vm2, %v2188_v0 }
 0x81f   : > { %v2274_v27 = vpop.f32.mrb[48].mxu1 }
 0x820   : > { %v2275_v28 = vadd.f32 %v2274_v27, %v2198_v24  ;;  %v2276_v20 = vpop.f32.mrb[49].mxu1 }
 0x821   : > { %v2277_v30 = vadd.f32 %v2276_v20, %v2198_v24 }
 0x822   : > { %v2291_v32 = vrot.slane %v2275_v28, 7 }
 0x823   : > { %v2292_v35 = vrot.slane %v2277_v30, 7 }
 0x824   : > { %v2295_v36 = vmul.f32 %v2291_v32, %v2287_v29 }
 0x825   : > { %v2296_v37 = vmul.f32 %v2292_v35, %v2288_v31 }
 0x826   : > { %v2297_v38 = vadd.f32 %v2295_v36, %v2281_v23 }
 0x827   : > { %v2298_v41 = vadd.f32 %v2296_v37, %v2282_v34 }
 0x829   : > { %v2301_v44 = vcombine.low %v2297_v38, %v2298_v41 }
 0x82b   : > { %v2308_v46 = vrot.slane %v2301_v44, %v2307_v39 }
 0x82d   : > { %v2309_v47 = vcombine.high %v2308_v46, %v2308_v46 }
 0x82f   : > { %v2316_v48 = vrot.slane %v2309_v47, %v2307_v39 }
 0x831   : > { %2322 = vst.msk [vmem:[%s551_s21] sm:$0x3] %vm2320_vm3, %v2316_v48 }
 0x832   : > { %2834 = shalt.err (!%p2831_p5)
}
 0x833   : > { %s2835_s19 = scalar_lea.hbm %s3503_s27, 32  ;;  %s2839_s29 = scalar_lea.hbm %s3563_s16, 64 }
 0x834   : > { %p2836_p7 = scmp.ne.s32.totalorder %s3503_s27, %s2835_s19  ;;  %p2840_p12 = scmp.lt.u32.totalorder %s3503_s27, %s3563_s16 }
 0x835   : > { %p2841_p13 = scmp.lt.u32.totalorder %s2839_s29, %s2835_s19  ;;  %p2843_p1 = scmp.lt.u32.totalorder %s2835_s19, %s3503_s27 }
 0x836   : > { %p2837_p10 = pnand %p2836_p7, %p3015_p6 }
 0x837   : > { %p2842_p0 = por %p2841_p13, %p2840_p12 }
 0x838   : > { %p2838_p11 = pneg %p2837_p10 }
 0x839   : > { %p2844_p2 = por %p2843_p1, %p2842_p0 }
 0x83b   : > { %p2845_p3 = pnand %p2844_p2, %p2838_p11 }
 0x83d   : > { %2848 = shalt.err (!%p2845_p3)
}
 0x83e   : > { %2579 = dma.vmem_to_hbm [thread:$0]  (%p3015_p6), %s3505_s22, 32, %s3503_s27, %s2324_s15  }
 0x83f PF: > { %s2350_s1 = sand.u32 1, %s2871_s23   ;;  %p2582_p4 = pnand %p2405_p9, %p3019_p8 }
 0x840   : > { %s2351_s20 = scalar_lea.sflag [#allocation5], %s2350_s1 }
 0x841   : > { %2866 = dma.done.wait (!%p2582_p4), %s2351_s20, 32  }
 0x842   : > { %2868 = vsyncadd (!%p2582_p4), %s2351_s20, 4294967264  ;;  %s3577_s23 = sld [smem:[#allocation7_spill]]  ;;  %s3578_s24 = sld [smem:[#allocation8_spill]] }
 0x843   : > { %s3579_s25 = sld [smem:[#allocation9_spill]]  ;;  %p28_p5 = scmp.ge.s32.totalorder %s3000_s28, 4  }
 0x844   : > { %s3580_s26 = smov %s3000_s28 }
 0x845   :  { %30 = sbr.rel (!%p28_p5) target bundleno = 6 (0x6), region = 147 }
 0x84c   :  { %2356 = vsyncpa [#allocation5], 1 }
 0x84d   :  { %2358 = vsyncpa [#allocation5 + $0x1], 1 }

</bundles_post_ra>
